<compile_context>
chip_gen: v5e
topology: v5e:2x2
jax: 0.10.0
libtpu: 0.0.40
codegen_flags: <defaults>
</compile_context>

<pallas_src>
import functools
import math

import jax
import jax.numpy as jnp
import numpy as np
from jax.experimental import pallas as pl
from jax.experimental.pallas import tpu as pltpu


def _rab_kernel(x_ref, gamma_ref, beta_ref,
                wq_ref, wk_ref, wv_ref, bq_ref, bk_ref, bv_ref,
                wo_ref, bo_ref,
                o_ref,
                k_sc, v_sc, q_sc, attn_sc, cat_sc,
                *, num_heads, head_dim, q_tile, kv_chunk, eps):
    qi = pl.program_id(1)
    L, _ = x_ref.shape
    H, D, TQ = num_heads, head_dim, q_tile

    gamma = gamma_ref[...]            # (1, E) f32
    beta = beta_ref[...]              # (1, E) f32

    def layernorm(t):                 # (rows, E) -> (rows, E), stats in f32
        t = t.astype(jnp.float32)
        mean = jnp.mean(t, axis=-1, keepdims=True)
        var = jnp.mean((t - mean) ** 2, axis=-1, keepdims=True)
        return (t - mean) * jax.lax.rsqrt(var + eps) * gamma + beta

    # ---- once per batch element: project K/V for the full sequence, chunked over L ----
    # (k_sc/v_sc persist across the qi axis; qi must stay the innermost, non-parallel axis.)
    @pl.when(qi == 0)
    def _():
        wk = wk_ref[...]
        wv = wv_ref[...]
        bk = bk_ref[...]
        bv = bv_ref[...]

        def proj_chunk(c, carry):
            off = pl.multiple_of(c * kv_chunk, kv_chunk)
            hc = layernorm(x_ref[pl.ds(off, kv_chunk), :]).astype(jnp.bfloat16)
            kc = (jnp.dot(hc, wk, preferred_element_type=jnp.float32) + bk).astype(jnp.bfloat16)
            vc = (jnp.dot(hc, wv, preferred_element_type=jnp.float32) + bv).astype(jnp.bfloat16)
            for h in range(H):        # static lane slices; only once per batch element
                lo = h * D
                k_sc[h, pl.ds(off, kv_chunk), :] = kc[:, lo:lo + D]
                v_sc[h, pl.ds(off, kv_chunk), :] = vc[:, lo:lo + D]
            return carry

        jax.lax.fori_loop(0, L // kv_chunk, proj_chunk, 0)

    # ---- this query tile: LayerNorm + ONE dense Q projection, scattered head-leading ----
    # (LayerNorm of the query rows is recomputed here - redundant with the qi==0 pass, but
    #  cheaper than keeping an (L, E) LayerNorm-output scratch resident.)
    qoff = pl.multiple_of(qi * TQ, TQ)
    xq = x_ref[pl.ds(qoff, TQ), :]                                           # (TQ, E) f32 (residual)
    hq = layernorm(xq).astype(jnp.bfloat16)
    # 1/sqrt(head_dim) is folded into wq / bq (prepare_params).
    q = jnp.dot(hq, wq_ref[...], preferred_element_type=jnp.float32) + bq_ref[...]
    q = q.astype(jnp.bfloat16)
    for h in range(H):                                                       # static lane slices
        q_sc[h] = q[:, h * D:(h + 1) * D]

    # ---- per-head attention: fori_loop (bounded live ranges), head-leading indexing ----
    def head_body(h, carry):
        qh = q_sc[h]                                                         # (TQ, D) bf16
        kh = k_sc[h]                                                         # (L, D)  bf16
        vh = v_sc[h]                                                         # (L, D)  bf16
        # scores contract on D (A @ B^T form, same as the canonical flash kernel).
        # TODO(synk): verify in the Mosaic MLIR that no per-head XLU transpose of kh is
        #             emitted; if it is, store K scratch pre-transposed as (H, D, L).
        s = jax.lax.dot_general(qh, kh, (((1,), (1,)), ((), ())),
                                preferred_element_type=jnp.float32)          # (TQ, L) f32
        s = s - jnp.max(s, axis=-1, keepdims=True)
        p = jnp.exp(s)
        inv = pl.reciprocal(jnp.sum(p, axis=-1, keepdims=True), approx=True)  # EUP slot
        p = (p * inv).astype(jnp.bfloat16)
        oh = jnp.dot(p, vh, preferred_element_type=jnp.float32)              # (TQ, D) f32
        attn_sc[h] = oh.astype(jnp.bfloat16)
        return carry

    jax.lax.fori_loop(0, H, head_body, 0)

    # ---- concat heads (static lane-offset stores) + ONE dense K=E output projection ----
    for h in range(H):
        cat_sc[:, h * D:(h + 1) * D] = attn_sc[h]
    out = jnp.dot(cat_sc[...], wo_ref[...], preferred_element_type=jnp.float32)

    # ---- output bias + StaticSkip residual ----
    o_ref[...] = (out + bo_ref[...] + xq).astype(o_ref.dtype)


def _vmem_limit_bytes():
    """Per-generation VMEM budget: 85% of physical capacity (v7x ~54 MiB, v5e/v6e ~108 MiB)."""
    cap = None
    try:
        cap = getattr(pltpu.get_tpu_info(), "vmem_capacity_bytes", None)
    except Exception:
        cap = None
    if not cap:
        cap = 64 * 1024 * 1024   # conservative fallback (v7x per-core physical)
    return int(cap * 0.85)


def prepare_params(params, *, num_heads):
    """One-time host-side weight transform: fold the attention scale into wq/bq, cast matmul
    weights to bf16 (LayerNorm params and biases stay f32)."""
    E = params["wq"].shape[0]
    head_dim = E // num_heads
    scale = 1.0 / math.sqrt(head_dim)
    out = dict(params)
    out["wq"] = (params["wq"] * scale).astype(jnp.bfloat16)
    out["bq"] = params["bq"] * scale
    out["wk"] = params["wk"].astype(jnp.bfloat16)
    out["wv"] = params["wv"].astype(jnp.bfloat16)
    out["wo"] = params["wo"].astype(jnp.bfloat16)
    return out


def residual_attention_block(x, kparams, *, num_heads, q_tile=256, kv_chunk=256):
    """x: (B, L, E) float32.  kparams: output of prepare_params().

    q_tile=256 fills the 256x256 MXU on v6e/v7x (also fine on v5e); kv_chunk bounds the f32
    transients of the once-per-batch K/V projection.  For L <= tile, one tile covers it.
    """
    B, L, E = x.shape
    assert E % num_heads == 0
    D = E // num_heads

    TQ = L if L <= q_tile else q_tile
    assert L % TQ == 0, "TODO(synk): ragged sequence lengths need a padded last tile"
    nq = L // TQ
    CL = L if L <= kv_chunk else kv_chunk
    assert L % CL == 0

    kernel = functools.partial(_rab_kernel, num_heads=num_heads, head_dim=D,
                               q_tile=TQ, kv_chunk=CL, eps=1e-5)

    weight_order = ("gamma", "beta", "wq", "wk", "wv", "bq", "bk", "bv", "wo", "bo")

    scratch = [
        pltpu.VMEM((num_heads, L, D), jnp.bfloat16),   # K, head-leading, per batch element
        pltpu.VMEM((num_heads, L, D), jnp.bfloat16),   # V, head-leading, per batch element
        pltpu.VMEM((num_heads, TQ, D), jnp.bfloat16),  # Q of the current tile, head-leading
        pltpu.VMEM((num_heads, TQ, D), jnp.bfloat16),  # per-head attention output
        pltpu.VMEM((TQ, E), jnp.bfloat16),             # concatenated attention output
    ]

    def build(single_buffer):
        def spec(shape, index_map):
            # Resident operands (block index constant along the inner qi axis) need only
            # a single buffer - default double-buffering would waste VMEM.
            if single_buffer:
                return pl.BlockSpec(shape, index_map, pipeline_mode=pl.Buffered(1))
            return pl.BlockSpec(shape, index_map)

        in_specs = [
            # Full (L, E) slab of x for batch b: DMA'd once per batch element; the kernel
            # slices query tiles out of it (no duplicate per-tile x input).
            spec((pl.Squeezed(), L, E), lambda b, qi: (b, 0, 0)),
        ]
        for name in weight_order:
            nd = kparams[name].ndim
            in_specs.append(spec(kparams[name].shape,
                                 (lambda _nd: (lambda b, qi: (0,) * _nd))(nd)))

        return pl.pallas_call(
            kernel,
            out_shape=jax.ShapeDtypeStruct((B, L, E), jnp.float32),
            grid_spec=pltpu.PrefetchScalarGridSpec(
                num_scalar_prefetch=0,
                grid=(B, nq),
                in_specs=in_specs,
                out_specs=pl.BlockSpec((pl.Squeezed(), TQ, E), lambda b, qi: (b, qi, 0)),
                scratch_shapes=scratch,
            ),
            compiler_params=pltpu.CompilerParams(
                # batch axis parallel (megacore); qi axis carries the K/V scratch so it must
                # stay "arbitrary" (see correctness note in the review).
                dimension_semantics=("parallel", "arbitrary"),
                vmem_limit_bytes=_vmem_limit_bytes(),
            ),
        )

    args = (x, *[kparams[n] for n in weight_order])
    try:
        return build(single_buffer=True)(*args)
    except Exception:
        # Compatibility fallback only: if this jax build does not accept
        # pipeline_mode=pl.Buffered(1), rerun with default double-buffering
        # (costs VMEM, not correctness).
        return build(single_buffer=False)(*args)


def reference(x, params, *, num_heads):
    """Pure-JAX f32 reference mirroring the PyTorch forward (eval mode)."""
    B, L, E = x.shape
    head_dim = E // num_heads
    mean = jnp.mean(x, axis=-1, keepdims=True)
    var = jnp.mean((x - mean) ** 2, axis=-1, keepdims=True)
    h = (x - mean) / jnp.sqrt(var + 1e-5)
    h = h * params["gamma"][0] + params["beta"][0]
    q = h @ params["wq"] + params["bq"][0]
    k = h @ params["wk"] + params["bk"][0]
    v = h @ params["wv"] + params["bv"][0]

    def split(t):  # (B, L, E) -> (B, H, L, D)
        return t.reshape(B, L, num_heads, head_dim).transpose(0, 2, 1, 3)

    qh, kh, vh = split(q), split(k), split(v)
    s = jnp.einsum("bhqd,bhkd->bhqk", qh, kh) / math.sqrt(head_dim)
    p = jax.nn.softmax(s, axis=-1)
    o = jnp.einsum("bhqk,bhkd->bhqd", p, vh)
    o = o.transpose(0, 2, 1, 3).reshape(B, L, E)
    o = o @ params["wo"] + params["bo"][0]
    return o + x


def init_params(key, embed_dim):
    ks = jax.random.split(key, 10)
    E = embed_dim
    s = 1.0 / math.sqrt(E)
    return {
        "gamma": jax.random.normal(ks[0], (1, E), jnp.float32) * 0.1 + 1.0,
        "beta":  jax.random.normal(ks[1], (1, E), jnp.float32) * 0.1,
        "wq": jax.random.uniform(ks[2], (E, E), jnp.float32, -s, s),
        "wk": jax.random.uniform(ks[3], (E, E), jnp.float32, -s, s),
        "wv": jax.random.uniform(ks[4], (E, E), jnp.float32, -s, s),
        "bq": jax.random.uniform(ks[5], (1, E), jnp.float32, -s, s),
        "bk": jax.random.uniform(ks[6], (1, E), jnp.float32, -s, s),
        "bv": jax.random.uniform(ks[7], (1, E), jnp.float32, -s, s),
        "wo": jax.random.uniform(ks[8], (E, E), jnp.float32, -s, s),
        "bo": jax.random.uniform(ks[9], (1, E), jnp.float32, -s, s),
    }


if __name__ == "__main__":
    B, L, E, H = 2, 8, 32, 4  # batch, seq, embed_dim, num_heads
    key = jax.random.PRNGKey(0)
    kx, kp = jax.random.split(key)
    x = jax.random.normal(kx, (B, L, E), jnp.float32)
    params = init_params(kp, E)
    kparams = prepare_params(params, num_heads=H)

    out = residual_attention_block(x, kparams, num_heads=H)
    out = jax.block_until_ready(out)

    ref = jax.block_until_ready(reference(x, params, num_heads=H))
    # tolerance accounts for bf16 MXU operands + approx reciprocal in the kernel
    np.testing.assert_allclose(np.asarray(out), np.asarray(ref), rtol=2e-2, atol=2e-2)

    print("KERNEL_OK")
</pallas_src>

<mosaic_0001>
module attributes {stable_mosaic.version = 11 : i64} {
  func.func @_rab_kernel(%arg0: i32, %arg1: i32, %arg2: memref<1x8x32xf32, #tpu.memory_space<vmem>>, %arg3: memref<1x32xf32, #tpu.memory_space<vmem>>, %arg4: memref<1x32xf32, #tpu.memory_space<vmem>>, %arg5: memref<32x32xbf16, #tpu.memory_space<vmem>>, %arg6: memref<32x32xbf16, #tpu.memory_space<vmem>>, %arg7: memref<32x32xbf16, #tpu.memory_space<vmem>>, %arg8: memref<1x32xf32, #tpu.memory_space<vmem>>, %arg9: memref<1x32xf32, #tpu.memory_space<vmem>>, %arg10: memref<1x32xf32, #tpu.memory_space<vmem>>, %arg11: memref<32x32xbf16, #tpu.memory_space<vmem>>, %arg12: memref<1x32xf32, #tpu.memory_space<vmem>>, %arg13: memref<1x8x32xf32, #tpu.memory_space<vmem>>, %arg14: memref<4x8x8xbf16, #tpu.memory_space<vmem>>, %arg15: memref<4x8x8xbf16, #tpu.memory_space<vmem>>, %arg16: memref<4x8x8xbf16, #tpu.memory_space<vmem>>, %arg17: memref<4x8x8xbf16, #tpu.memory_space<vmem>>, %arg18: memref<8x32xbf16, #tpu.memory_space<vmem>>) attributes {dimension_semantics = [#tpu.dimension_semantics<parallel>, #tpu.dimension_semantics<arbitrary>], iteration_bounds = array<i64: 2, 1>, scalar_prefetch = 0 : i64, scratch_operands = 5 : i64, tpu.core_type = #tpu.core_type<tc>, window_params = [{pipeline_mode = #tpu.pipeline_mode<synchronous>, transform_indices = @transform_0, window_bounds = array<i64: 1, 8, 32>}, {pipeline_mode = #tpu.pipeline_mode<synchronous>, transform_indices = @transform_1, window_bounds = array<i64: 1, 32>}, {pipeline_mode = #tpu.pipeline_mode<synchronous>, transform_indices = @transform_2, window_bounds = array<i64: 1, 32>}, {pipeline_mode = #tpu.pipeline_mode<synchronous>, transform_indices = @transform_3, window_bounds = array<i64: 32, 32>}, {pipeline_mode = #tpu.pipeline_mode<synchronous>, transform_indices = @transform_4, window_bounds = array<i64: 32, 32>}, {pipeline_mode = #tpu.pipeline_mode<synchronous>, transform_indices = @transform_5, window_bounds = array<i64: 32, 32>}, {pipeline_mode = #tpu.pipeline_mode<synchronous>, transform_indices = @transform_6, window_bounds = array<i64: 1, 32>}, {pipeline_mode = #tpu.pipeline_mode<synchronous>, transform_indices = @transform_7, window_bounds = array<i64: 1, 32>}, {pipeline_mode = #tpu.pipeline_mode<synchronous>, transform_indices = @transform_8, window_bounds = array<i64: 1, 32>}, {pipeline_mode = #tpu.pipeline_mode<synchronous>, transform_indices = @transform_9, window_bounds = array<i64: 32, 32>}, {pipeline_mode = #tpu.pipeline_mode<synchronous>, transform_indices = @transform_10, window_bounds = array<i64: 1, 32>}, {transform_indices = @transform_11, window_bounds = array<i64: 1, 8, 32>}]} {
    %c0 = arith.constant 0 : index
    %c0_0 = arith.constant 0 : index
    %0 = vector.load %arg3[%c0, %c0_0] : memref<1x32xf32, #tpu.memory_space<vmem>>, vector<1x32xf32>
    %c0_1 = arith.constant 0 : index
    %c0_2 = arith.constant 0 : index
    %1 = vector.load %arg4[%c0_1, %c0_2] : memref<1x32xf32, #tpu.memory_space<vmem>>, vector<1x32xf32>
    %c0_i32 = arith.constant 0 : i32
    %2 = arith.cmpi eq, %arg1, %c0_i32 : i32
    %3 = arith.extui %2 : i1 to i32
    %c0_i32_3 = arith.constant 0 : i32
    %4 = arith.cmpi ne, %3, %c0_i32_3 : i32
    scf.if %4 {
      %c0_53 = arith.constant 0 : index
      %c0_54 = arith.constant 0 : index
      %78 = vector.load %arg6[%c0_53, %c0_54] : memref<32x32xbf16, #tpu.memory_space<vmem>>, vector<32x32xbf16>
      %c0_55 = arith.constant 0 : index
      %c0_56 = arith.constant 0 : index
      %79 = vector.load %arg7[%c0_55, %c0_56] : memref<32x32xbf16, #tpu.memory_space<vmem>>, vector<32x32xbf16>
      %c0_57 = arith.constant 0 : index
      %c0_58 = arith.constant 0 : index
      %80 = vector.load %arg9[%c0_57, %c0_58] : memref<1x32xf32, #tpu.memory_space<vmem>>, vector<1x32xf32>
      %c0_59 = arith.constant 0 : index
      %c0_60 = arith.constant 0 : index
      %81 = vector.load %arg10[%c0_59, %c0_60] : memref<1x32xf32, #tpu.memory_space<vmem>>, vector<1x32xf32>
      %c0_i32_61 = arith.constant 0 : i32
      %c8_i32_62 = arith.constant 8 : i32
      %82 = arith.muli %c0_i32_61, %c8_i32_62 : i32
      %83 = tpu.assume_multiple %82, 8 : i32
      %c0_63 = arith.constant 0 : index
      %84 = arith.index_cast %83 : i32 to index
      %c0_64 = arith.constant 0 : index
      %85 = vector.load %arg2[%c0_63, %84, %c0_64] : memref<1x8x32xf32, #tpu.memory_space<vmem>>, vector<1x8x32xf32>
      %86 = vector.shape_cast %85 : vector<1x8x32xf32> to vector<8x32xf32>
      %cst_65 = arith.constant dense<0.000000e+00> : vector<8xf32>
      %87 = vector.multi_reduction <add>, %86, %cst_65 [1] : vector<8x32xf32> to vector<8xf32>
      %88 = vector.shape_cast %87 : vector<8xf32> to vector<8x1xf32>
      %cst_66 = arith.constant 3.200000e+01 : f32
      %89 = vector.broadcast %cst_66 : f32 to vector<8x1xf32>
      %90 = arith.divf %88, %89 : vector<8x1xf32>
      %91 = vector.broadcast %90 : vector<8x1xf32> to vector<8x32xf32>
      %92 = arith.subf %86, %91 : vector<8x32xf32>
      %93 = arith.mulf %92, %92 : vector<8x32xf32>
      %cst_67 = arith.constant dense<0.000000e+00> : vector<8xf32>
      %94 = vector.multi_reduction <add>, %93, %cst_67 [1] : vector<8x32xf32> to vector<8xf32>
      %95 = vector.shape_cast %94 : vector<8xf32> to vector<8x1xf32>
      %cst_68 = arith.constant 3.200000e+01 : f32
      %96 = vector.broadcast %cst_68 : f32 to vector<8x1xf32>
      %97 = arith.divf %95, %96 : vector<8x1xf32>
      %98 = vector.broadcast %90 : vector<8x1xf32> to vector<8x32xf32>
      %99 = arith.subf %86, %98 : vector<8x32xf32>
      %cst_69 = arith.constant 9.99999974E-6 : f32
      %100 = vector.broadcast %cst_69 : f32 to vector<8x1xf32>
      %101 = arith.addf %97, %100 : vector<8x1xf32>
      %102 = math.rsqrt %101 : vector<8x1xf32>
      %103 = vector.broadcast %102 : vector<8x1xf32> to vector<8x32xf32>
      %104 = arith.mulf %99, %103 : vector<8x32xf32>
      %105 = vector.broadcast %0 : vector<1x32xf32> to vector<8x32xf32>
      %106 = arith.mulf %104, %105 : vector<8x32xf32>
      %107 = vector.broadcast %1 : vector<1x32xf32> to vector<8x32xf32>
      %108 = arith.addf %106, %107 : vector<8x32xf32>
      %109 = arith.truncf %108 : vector<8x32xf32> to vector<8x32xbf16>
      %cst_70 = arith.constant dense<0.000000e+00> : vector<8x32xf32>
      %110 = tpu.matmul %109, %78, %cst_70 {dimension_numbers = #tpu.dot_dimension_numbers<[1], [0], [0], [1], [0, 0, 1, 1], [], []>} : vector<8x32xbf16>, vector<32x32xbf16>, vector<8x32xf32> -> vector<8x32xf32>
      %111 = vector.broadcast %80 : vector<1x32xf32> to vector<8x32xf32>
      %112 = arith.addf %110, %111 : vector<8x32xf32>
      %113 = arith.truncf %112 : vector<8x32xf32> to vector<8x32xbf16>
      %cst_71 = arith.constant dense<0.000000e+00> : vector<8x32xf32>
      %114 = tpu.matmul %109, %79, %cst_71 {dimension_numbers = #tpu.dot_dimension_numbers<[1], [0], [0], [1], [0, 0, 1, 1], [], []>} : vector<8x32xbf16>, vector<32x32xbf16>, vector<8x32xf32> -> vector<8x32xf32>
      %115 = vector.broadcast %81 : vector<1x32xf32> to vector<8x32xf32>
      %116 = arith.addf %114, %115 : vector<8x32xf32>
      %117 = arith.truncf %116 : vector<8x32xf32> to vector<8x32xbf16>
      %118 = vector.extract_strided_slice %113 {offsets = [0, 0], sizes = [8, 8], strides = [1, 1]} : vector<8x32xbf16> to vector<8x8xbf16>
      %c0_72 = arith.constant 0 : index
      %119 = arith.index_cast %83 : i32 to index
      %c0_73 = arith.constant 0 : index
      %120 = vector.load %arg14[%c0_72, %119, %c0_73] : memref<4x8x8xbf16, #tpu.memory_space<vmem>>, vector<1x8x8xbf16>
      %121 = vector.shape_cast %120 : vector<1x8x8xbf16> to vector<8x8xbf16>
      %122 = vector.shape_cast %118 : vector<8x8xbf16> to vector<1x8x8xbf16>
      tpu.vector_store %arg14[%c0_72, %119, %c0_73], %122 {strides = array<i32>} : memref<4x8x8xbf16, #tpu.memory_space<vmem>>, vector<1x8x8xbf16>,
      %123 = vector.extract_strided_slice %117 {offsets = [0, 0], sizes = [8, 8], strides = [1, 1]} : vector<8x32xbf16> to vector<8x8xbf16>
      %c0_74 = arith.constant 0 : index
      %124 = arith.index_cast %83 : i32 to index
      %c0_75 = arith.constant 0 : index
      %125 = vector.load %arg15[%c0_74, %124, %c0_75] : memref<4x8x8xbf16, #tpu.memory_space<vmem>>, vector<1x8x8xbf16>
      %126 = vector.shape_cast %125 : vector<1x8x8xbf16> to vector<8x8xbf16>
      %127 = vector.shape_cast %123 : vector<8x8xbf16> to vector<1x8x8xbf16>
      tpu.vector_store %arg15[%c0_74, %124, %c0_75], %127 {strides = array<i32>} : memref<4x8x8xbf16, #tpu.memory_space<vmem>>, vector<1x8x8xbf16>,
      %128 = vector.extract_strided_slice %113 {offsets = [0, 8], sizes = [8, 8], strides = [1, 1]} : vector<8x32xbf16> to vector<8x8xbf16>
      %c1_76 = arith.constant 1 : index
      %129 = arith.index_cast %83 : i32 to index
      %c0_77 = arith.constant 0 : index
      %130 = vector.load %arg14[%c1_76, %129, %c0_77] : memref<4x8x8xbf16, #tpu.memory_space<vmem>>, vector<1x8x8xbf16>
      %131 = vector.shape_cast %130 : vector<1x8x8xbf16> to vector<8x8xbf16>
      %132 = vector.shape_cast %128 : vector<8x8xbf16> to vector<1x8x8xbf16>
      tpu.vector_store %arg14[%c1_76, %129, %c0_77], %132 {strides = array<i32>} : memref<4x8x8xbf16, #tpu.memory_space<vmem>>, vector<1x8x8xbf16>,
      %133 = vector.extract_strided_slice %117 {offsets = [0, 8], sizes = [8, 8], strides = [1, 1]} : vector<8x32xbf16> to vector<8x8xbf16>
      %c1_78 = arith.constant 1 : index
      %134 = arith.index_cast %83 : i32 to index
      %c0_79 = arith.constant 0 : index
      %135 = vector.load %arg15[%c1_78, %134, %c0_79] : memref<4x8x8xbf16, #tpu.memory_space<vmem>>, vector<1x8x8xbf16>
      %136 = vector.shape_cast %135 : vector<1x8x8xbf16> to vector<8x8xbf16>
      %137 = vector.shape_cast %133 : vector<8x8xbf16> to vector<1x8x8xbf16>
      tpu.vector_store %arg15[%c1_78, %134, %c0_79], %137 {strides = array<i32>} : memref<4x8x8xbf16, #tpu.memory_space<vmem>>, vector<1x8x8xbf16>,
      %138 = vector.extract_strided_slice %113 {offsets = [0, 16], sizes = [8, 8], strides = [1, 1]} : vector<8x32xbf16> to vector<8x8xbf16>
      %c2_80 = arith.constant 2 : index
      %139 = arith.index_cast %83 : i32 to index
      %c0_81 = arith.constant 0 : index
      %140 = vector.load %arg14[%c2_80, %139, %c0_81] : memref<4x8x8xbf16, #tpu.memory_space<vmem>>, vector<1x8x8xbf16>
      %141 = vector.shape_cast %140 : vector<1x8x8xbf16> to vector<8x8xbf16>
      %142 = vector.shape_cast %138 : vector<8x8xbf16> to vector<1x8x8xbf16>
      tpu.vector_store %arg14[%c2_80, %139, %c0_81], %142 {strides = array<i32>} : memref<4x8x8xbf16, #tpu.memory_space<vmem>>, vector<1x8x8xbf16>,
      %143 = vector.extract_strided_slice %117 {offsets = [0, 16], sizes = [8, 8], strides = [1, 1]} : vector<8x32xbf16> to vector<8x8xbf16>
      %c2_82 = arith.constant 2 : index
      %144 = arith.index_cast %83 : i32 to index
      %c0_83 = arith.constant 0 : index
      %145 = vector.load %arg15[%c2_82, %144, %c0_83] : memref<4x8x8xbf16, #tpu.memory_space<vmem>>, vector<1x8x8xbf16>
      %146 = vector.shape_cast %145 : vector<1x8x8xbf16> to vector<8x8xbf16>
      %147 = vector.shape_cast %143 : vector<8x8xbf16> to vector<1x8x8xbf16>
      tpu.vector_store %arg15[%c2_82, %144, %c0_83], %147 {strides = array<i32>} : memref<4x8x8xbf16, #tpu.memory_space<vmem>>, vector<1x8x8xbf16>,
      %148 = vector.extract_strided_slice %113 {offsets = [0, 24], sizes = [8, 8], strides = [1, 1]} : vector<8x32xbf16> to vector<8x8xbf16>
      %c3_84 = arith.constant 3 : index
      %149 = arith.index_cast %83 : i32 to index
      %c0_85 = arith.constant 0 : index
      %150 = vector.load %arg14[%c3_84, %149, %c0_85] : memref<4x8x8xbf16, #tpu.memory_space<vmem>>, vector<1x8x8xbf16>
      %151 = vector.shape_cast %150 : vector<1x8x8xbf16> to vector<8x8xbf16>
      %152 = vector.shape_cast %148 : vector<8x8xbf16> to vector<1x8x8xbf16>
      tpu.vector_store %arg14[%c3_84, %149, %c0_85], %152 {strides = array<i32>} : memref<4x8x8xbf16, #tpu.memory_space<vmem>>, vector<1x8x8xbf16>,
      %153 = vector.extract_strided_slice %117 {offsets = [0, 24], sizes = [8, 8], strides = [1, 1]} : vector<8x32xbf16> to vector<8x8xbf16>
      %c3_86 = arith.constant 3 : index
      %154 = arith.index_cast %83 : i32 to index
      %c0_87 = arith.constant 0 : index
      %155 = vector.load %arg15[%c3_86, %154, %c0_87] : memref<4x8x8xbf16, #tpu.memory_space<vmem>>, vector<1x8x8xbf16>
      %156 = vector.shape_cast %155 : vector<1x8x8xbf16> to vector<8x8xbf16>
      %157 = vector.shape_cast %153 : vector<8x8xbf16> to vector<1x8x8xbf16>
      tpu.vector_store %arg15[%c3_86, %154, %c0_87], %157 {strides = array<i32>} : memref<4x8x8xbf16, #tpu.memory_space<vmem>>, vector<1x8x8xbf16>,
      %c1_i32_88 = arith.constant 1 : i32
    } else {
    }
    %c8_i32 = arith.constant 8 : i32
    %5 = arith.muli %arg1, %c8_i32 : i32
    %6 = tpu.assume_multiple %5, 8 : i32
    %c0_4 = arith.constant 0 : index
    %7 = arith.index_cast %6 : i32 to index
    %c0_5 = arith.constant 0 : index
    %8 = vector.load %arg2[%c0_4, %7, %c0_5] : memref<1x8x32xf32, #tpu.memory_space<vmem>>, vector<1x8x32xf32>
    %9 = vector.shape_cast %8 : vector<1x8x32xf32> to vector<8x32xf32>
    %cst = arith.constant dense<0.000000e+00> : vector<8xf32>
    %10 = vector.multi_reduction <add>, %9, %cst [1] : vector<8x32xf32> to vector<8xf32>
    %11 = vector.shape_cast %10 : vector<8xf32> to vector<8x1xf32>
    %cst_6 = arith.constant 3.200000e+01 : f32
    %12 = vector.broadcast %cst_6 : f32 to vector<8x1xf32>
    %13 = arith.divf %11, %12 : vector<8x1xf32>
    %14 = vector.broadcast %13 : vector<8x1xf32> to vector<8x32xf32>
    %15 = arith.subf %9, %14 : vector<8x32xf32>
    %16 = arith.mulf %15, %15 : vector<8x32xf32>
    %cst_7 = arith.constant dense<0.000000e+00> : vector<8xf32>
    %17 = vector.multi_reduction <add>, %16, %cst_7 [1] : vector<8x32xf32> to vector<8xf32>
    %18 = vector.shape_cast %17 : vector<8xf32> to vector<8x1xf32>
    %cst_8 = arith.constant 3.200000e+01 : f32
    %19 = vector.broadcast %cst_8 : f32 to vector<8x1xf32>
    %20 = arith.divf %18, %19 : vector<8x1xf32>
    %21 = vector.broadcast %13 : vector<8x1xf32> to vector<8x32xf32>
    %22 = arith.subf %9, %21 : vector<8x32xf32>
    %cst_9 = arith.constant 9.99999974E-6 : f32
    %23 = vector.broadcast %cst_9 : f32 to vector<8x1xf32>
    %24 = arith.addf %20, %23 : vector<8x1xf32>
    %25 = math.rsqrt %24 : vector<8x1xf32>
    %26 = vector.broadcast %25 : vector<8x1xf32> to vector<8x32xf32>
    %27 = arith.mulf %22, %26 : vector<8x32xf32>
    %28 = vector.broadcast %0 : vector<1x32xf32> to vector<8x32xf32>
    %29 = arith.mulf %27, %28 : vector<8x32xf32>
    %30 = vector.broadcast %1 : vector<1x32xf32> to vector<8x32xf32>
    %31 = arith.addf %29, %30 : vector<8x32xf32>
    %32 = arith.truncf %31 : vector<8x32xf32> to vector<8x32xbf16>
    %c0_10 = arith.constant 0 : index
    %c0_11 = arith.constant 0 : index
    %33 = vector.load %arg5[%c0_10, %c0_11] : memref<32x32xbf16, #tpu.memory_space<vmem>>, vector<32x32xbf16>
    %cst_12 = arith.constant dense<0.000000e+00> : vector<8x32xf32>
    %34 = tpu.matmul %32, %33, %cst_12 {dimension_numbers = #tpu.dot_dimension_numbers<[1], [0], [0], [1], [0, 0, 1, 1], [], []>} : vector<8x32xbf16>, vector<32x32xbf16>, vector<8x32xf32> -> vector<8x32xf32>
    %c0_13 = arith.constant 0 : index
    %c0_14 = arith.constant 0 : index
    %35 = vector.load %arg8[%c0_13, %c0_14] : memref<1x32xf32, #tpu.memory_space<vmem>>, vector<1x32xf32>
    %36 = vector.broadcast %35 : vector<1x32xf32> to vector<8x32xf32>
    %37 = arith.addf %34, %36 : vector<8x32xf32>
    %38 = arith.truncf %37 : vector<8x32xf32> to vector<8x32xbf16>
    %39 = vector.extract_strided_slice %38 {offsets = [0, 0], sizes = [8, 8], strides = [1, 1]} : vector<8x32xbf16> to vector<8x8xbf16>
    %c0_15 = arith.constant 0 : index
    %c0_16 = arith.constant 0 : index
    %c0_17 = arith.constant 0 : index
    %40 = vector.load %arg16[%c0_15, %c0_16, %c0_17] : memref<4x8x8xbf16, #tpu.memory_space<vmem>>, vector<1x8x8xbf16>
    %41 = vector.shape_cast %40 : vector<1x8x8xbf16> to vector<8x8xbf16>
    %42 = vector.shape_cast %39 : vector<8x8xbf16> to vector<1x8x8xbf16>
    tpu.vector_store %arg16[%c0_15, %c0_16, %c0_17], %42 {strides = array<i32>} : memref<4x8x8xbf16, #tpu.memory_space<vmem>>, vector<1x8x8xbf16>,
    %43 = vector.extract_strided_slice %38 {offsets = [0, 8], sizes = [8, 8], strides = [1, 1]} : vector<8x32xbf16> to vector<8x8xbf16>
    %c1 = arith.constant 1 : index
    %c0_18 = arith.constant 0 : index
    %c0_19 = arith.constant 0 : index
    %44 = vector.load %arg16[%c1, %c0_18, %c0_19] : memref<4x8x8xbf16, #tpu.memory_space<vmem>>, vector<1x8x8xbf16>
    %45 = vector.shape_cast %44 : vector<1x8x8xbf16> to vector<8x8xbf16>
    %46 = vector.shape_cast %43 : vector<8x8xbf16> to vector<1x8x8xbf16>
    tpu.vector_store %arg16[%c1, %c0_18, %c0_19], %46 {strides = array<i32>} : memref<4x8x8xbf16, #tpu.memory_space<vmem>>, vector<1x8x8xbf16>,
    %47 = vector.extract_strided_slice %38 {offsets = [0, 16], sizes = [8, 8], strides = [1, 1]} : vector<8x32xbf16> to vector<8x8xbf16>
    %c2 = arith.constant 2 : index
    %c0_20 = arith.constant 0 : index
    %c0_21 = arith.constant 0 : index
    %48 = vector.load %arg16[%c2, %c0_20, %c0_21] : memref<4x8x8xbf16, #tpu.memory_space<vmem>>, vector<1x8x8xbf16>
    %49 = vector.shape_cast %48 : vector<1x8x8xbf16> to vector<8x8xbf16>
    %50 = vector.shape_cast %47 : vector<8x8xbf16> to vector<1x8x8xbf16>
    tpu.vector_store %arg16[%c2, %c0_20, %c0_21], %50 {strides = array<i32>} : memref<4x8x8xbf16, #tpu.memory_space<vmem>>, vector<1x8x8xbf16>,
    %51 = vector.extract_strided_slice %38 {offsets = [0, 24], sizes = [8, 8], strides = [1, 1]} : vector<8x32xbf16> to vector<8x8xbf16>
    %c3 = arith.constant 3 : index
    %c0_22 = arith.constant 0 : index
    %c0_23 = arith.constant 0 : index
    %52 = vector.load %arg16[%c3, %c0_22, %c0_23] : memref<4x8x8xbf16, #tpu.memory_space<vmem>>, vector<1x8x8xbf16>
    %53 = vector.shape_cast %52 : vector<1x8x8xbf16> to vector<8x8xbf16>
    %54 = vector.shape_cast %51 : vector<8x8xbf16> to vector<1x8x8xbf16>
    tpu.vector_store %arg16[%c3, %c0_22, %c0_23], %54 {strides = array<i32>} : memref<4x8x8xbf16, #tpu.memory_space<vmem>>, vector<1x8x8xbf16>,
    %c0_i32_24 = arith.constant 0 : i32
    %c4_i32 = arith.constant 4 : i32
    %55 = arith.addi %c0_i32_24, %c4_i32 : i32
    %c1_i32 = arith.constant 1 : i32
    scf.for %arg19 = %c0_i32_24 to %55 step %c1_i32  : i32 {
      %78 = arith.index_cast %arg19 : i32 to index
      %c0_53 = arith.constant 0 : index
      %c0_54 = arith.constant 0 : index
      %79 = vector.load %arg16[%78, %c0_53, %c0_54] : memref<4x8x8xbf16, #tpu.memory_space<vmem>>, vector<1x8x8xbf16>
      %80 = vector.shape_cast %79 : vector<1x8x8xbf16> to vector<8x8xbf16>
      %81 = arith.index_cast %arg19 : i32 to index
      %c0_55 = arith.constant 0 : index
      %c0_56 = arith.constant 0 : index
      %82 = vector.load %arg14[%81, %c0_55, %c0_56] : memref<4x8x8xbf16, #tpu.memory_space<vmem>>, vector<1x8x8xbf16>
      %83 = vector.shape_cast %82 : vector<1x8x8xbf16> to vector<8x8xbf16>
      %84 = arith.index_cast %arg19 : i32 to index
      %c0_57 = arith.constant 0 : index
      %c0_58 = arith.constant 0 : index
      %85 = vector.load %arg15[%84, %c0_57, %c0_58] : memref<4x8x8xbf16, #tpu.memory_space<vmem>>, vector<1x8x8xbf16>
      %86 = vector.shape_cast %85 : vector<1x8x8xbf16> to vector<8x8xbf16>
      %cst_59 = arith.constant dense<0.000000e+00> : vector<8x8xf32>
      %87 = tpu.matmul %80, %83, %cst_59 {dimension_numbers = #tpu.dot_dimension_numbers<[1], [1], [0], [0], [0, 0, 1, 0], [], []>} : vector<8x8xbf16>, vector<8x8xbf16>, vector<8x8xf32> -> vector<8x8xf32>
      %cst_60 = arith.constant dense<0xFF800000> : vector<8xf32>
      %88 = vector.multi_reduction <maximumf>, %87, %cst_60 [1] : vector<8x8xf32> to vector<8xf32>
      %89 = vector.shape_cast %88 : vector<8xf32> to vector<8x1xf32>
      %90 = vector.broadcast %89 : vector<8x1xf32> to vector<8x8xf32>
      %91 = arith.subf %87, %90 : vector<8x8xf32>
      %92 = math.exp %91 : vector<8x8xf32>
      %cst_61 = arith.constant dense<0.000000e+00> : vector<8xf32>
      %93 = vector.multi_reduction <add>, %92, %cst_61 [1] : vector<8x8xf32> to vector<8xf32>
      %94 = vector.shape_cast %93 : vector<8xf32> to vector<8x1xf32>
      %95 = tpu.reciprocal %94 {approx = true} : vector<8x1xf32> -> vector<8x1xf32>
      %96 = vector.broadcast %95 : vector<8x1xf32> to vector<8x8xf32>
      %97 = arith.mulf %92, %96 : vector<8x8xf32>
      %98 = arith.truncf %97 : vector<8x8xf32> to vector<8x8xbf16>
      %cst_62 = arith.constant dense<0.000000e+00> : vector<8x8xf32>
      %99 = tpu.matmul %98, %86, %cst_62 {dimension_numbers = #tpu.dot_dimension_numbers<[1], [0], [0], [1], [0, 0, 1, 1], [], []>} : vector<8x8xbf16>, vector<8x8xbf16>, vector<8x8xf32> -> vector<8x8xf32>
      %100 = arith.truncf %99 : vector<8x8xf32> to vector<8x8xbf16>
      %101 = arith.index_cast %arg19 : i32 to index
      %c0_63 = arith.constant 0 : index
      %c0_64 = arith.constant 0 : index
      %102 = vector.load %arg17[%101, %c0_63, %c0_64] : memref<4x8x8xbf16, #tpu.memory_space<vmem>>, vector<1x8x8xbf16>
      %103 = vector.shape_cast %102 : vector<1x8x8xbf16> to vector<8x8xbf16>
      %104 = vector.shape_cast %100 : vector<8x8xbf16> to vector<1x8x8xbf16>
      tpu.vector_store %arg17[%101, %c0_63, %c0_64], %104 {strides = array<i32>} : memref<4x8x8xbf16, #tpu.memory_space<vmem>>, vector<1x8x8xbf16>,
    }
    %c4_i32_25 = arith.constant 4 : i32
    %c0_26 = arith.constant 0 : index
    %c0_27 = arith.constant 0 : index
    %c0_28 = arith.constant 0 : index
    %56 = vector.load %arg17[%c0_26, %c0_27, %c0_28] : memref<4x8x8xbf16, #tpu.memory_space<vmem>>, vector<1x8x8xbf16>
    %57 = vector.shape_cast %56 : vector<1x8x8xbf16> to vector<8x8xbf16>
    %c0_29 = arith.constant 0 : index
    %c0_30 = arith.constant 0 : index
    %58 = vector.load %arg18[%c0_29, %c0_30] : memref<8x32xbf16, #tpu.memory_space<vmem>>, vector<8x8xbf16>
    tpu.vector_store %arg18[%c0_29, %c0_30], %57 {strides = array<i32>} : memref<8x32xbf16, #tpu.memory_space<vmem>>, vector<8x8xbf16>,
    %c1_31 = arith.constant 1 : index
    %c0_32 = arith.constant 0 : index
    %c0_33 = arith.constant 0 : index
    %59 = vector.load %arg17[%c1_31, %c0_32, %c0_33] : memref<4x8x8xbf16, #tpu.memory_space<vmem>>, vector<1x8x8xbf16>
    %60 = vector.shape_cast %59 : vector<1x8x8xbf16> to vector<8x8xbf16>
    %c0_34 = arith.constant 0 : index
    %c8 = arith.constant 8 : index
    %61 = vector.load %arg18[%c0_34, %c8] : memref<8x32xbf16, #tpu.memory_space<vmem>>, vector<8x8xbf16>
    tpu.vector_store %arg18[%c0_34, %c8], %60 {strides = array<i32>} : memref<8x32xbf16, #tpu.memory_space<vmem>>, vector<8x8xbf16>,
    %c2_35 = arith.constant 2 : index
    %c0_36 = arith.constant 0 : index
    %c0_37 = arith.constant 0 : index
    %62 = vector.load %arg17[%c2_35, %c0_36, %c0_37] : memref<4x8x8xbf16, #tpu.memory_space<vmem>>, vector<1x8x8xbf16>
    %63 = vector.shape_cast %62 : vector<1x8x8xbf16> to vector<8x8xbf16>
    %c0_38 = arith.constant 0 : index
    %c16 = arith.constant 16 : index
    %64 = vector.load %arg18[%c0_38, %c16] : memref<8x32xbf16, #tpu.memory_space<vmem>>, vector<8x8xbf16>
    tpu.vector_store %arg18[%c0_38, %c16], %63 {strides = array<i32>} : memref<8x32xbf16, #tpu.memory_space<vmem>>, vector<8x8xbf16>,
    %c3_39 = arith.constant 3 : index
    %c0_40 = arith.constant 0 : index
    %c0_41 = arith.constant 0 : index
    %65 = vector.load %arg17[%c3_39, %c0_40, %c0_41] : memref<4x8x8xbf16, #tpu.memory_space<vmem>>, vector<1x8x8xbf16>
    %66 = vector.shape_cast %65 : vector<1x8x8xbf16> to vector<8x8xbf16>
    %c0_42 = arith.constant 0 : index
    %c24 = arith.constant 24 : index
    %67 = vector.load %arg18[%c0_42, %c24] : memref<8x32xbf16, #tpu.memory_space<vmem>>, vector<8x8xbf16>
    tpu.vector_store %arg18[%c0_42, %c24], %66 {strides = array<i32>} : memref<8x32xbf16, #tpu.memory_space<vmem>>, vector<8x8xbf16>,
    %c0_43 = arith.constant 0 : index
    %c0_44 = arith.constant 0 : index
    %68 = vector.load %arg18[%c0_43, %c0_44] : memref<8x32xbf16, #tpu.memory_space<vmem>>, vector<8x32xbf16>
    %c0_45 = arith.constant 0 : index
    %c0_46 = arith.constant 0 : index
    %69 = vector.load %arg11[%c0_45, %c0_46] : memref<32x32xbf16, #tpu.memory_space<vmem>>, vector<32x32xbf16>
    %cst_47 = arith.constant dense<0.000000e+00> : vector<8x32xf32>
    %70 = tpu.matmul %68, %69, %cst_47 {dimension_numbers = #tpu.dot_dimension_numbers<[1], [0], [0], [1], [0, 0, 1, 1], [], []>} : vector<8x32xbf16>, vector<32x32xbf16>, vector<8x32xf32> -> vector<8x32xf32>
    %c0_48 = arith.constant 0 : index
    %c0_49 = arith.constant 0 : index
    %71 = vector.load %arg12[%c0_48, %c0_49] : memref<1x32xf32, #tpu.memory_space<vmem>>, vector<1x32xf32>
    %72 = vector.broadcast %71 : vector<1x32xf32> to vector<8x32xf32>
    %73 = arith.addf %70, %72 : vector<8x32xf32>
    %74 = arith.addf %73, %9 : vector<8x32xf32>
    %c0_50 = arith.constant 0 : index
    %c0_51 = arith.constant 0 : index
    %c0_52 = arith.constant 0 : index
    %75 = vector.load %arg13[%c0_50, %c0_51, %c0_52] : memref<1x8x32xf32, #tpu.memory_space<vmem>>, vector<1x8x32xf32>
    %76 = vector.shape_cast %75 : vector<1x8x32xf32> to vector<8x32xf32>
    %77 = vector.shape_cast %74 : vector<8x32xf32> to vector<1x8x32xf32>
    tpu.vector_store %arg13[%c0_50, %c0_51, %c0_52], %77 {strides = array<i32>} : memref<1x8x32xf32, #tpu.memory_space<vmem>>, vector<1x8x32xf32>,
    return
  }
  func.func @transform_0(%arg0: i32, %arg1: i32) -> (i32, i32, i32) {
    %c0_i32 = arith.constant 0 : i32
    %c0_i32_0 = arith.constant 0 : i32
    %c0_i32_1 = arith.constant 0 : i32
    return %arg0, %c0_i32, %c0_i32_0 : i32, i32, i32
  }
  func.func @transform_1(%arg0: i32, %arg1: i32) -> (i32, i32) {
    %c0_i32 = arith.constant 0 : i32
    %c0_i32_0 = arith.constant 0 : i32
    %c0_i32_1 = arith.constant 0 : i32
    return %c0_i32, %c0_i32_0 : i32, i32
  }
  func.func @transform_2(%arg0: i32, %arg1: i32) -> (i32, i32) {
    %c0_i32 = arith.constant 0 : i32
    %c0_i32_0 = arith.constant 0 : i32
    %c0_i32_1 = arith.constant 0 : i32
    return %c0_i32, %c0_i32_0 : i32, i32
  }
  func.func @transform_3(%arg0: i32, %arg1: i32) -> (i32, i32) {
    %c0_i32 = arith.constant 0 : i32
    %c0_i32_0 = arith.constant 0 : i32
    %c0_i32_1 = arith.constant 0 : i32
    return %c0_i32, %c0_i32_0 : i32, i32
  }
  func.func @transform_4(%arg0: i32, %arg1: i32) -> (i32, i32) {
    %c0_i32 = arith.constant 0 : i32
    %c0_i32_0 = arith.constant 0 : i32
    %c0_i32_1 = arith.constant 0 : i32
    return %c0_i32, %c0_i32_0 : i32, i32
  }
  func.func @transform_5(%arg0: i32, %arg1: i32) -> (i32, i32) {
    %c0_i32 = arith.constant 0 : i32
    %c0_i32_0 = arith.constant 0 : i32
    %c0_i32_1 = arith.constant 0 : i32
    return %c0_i32, %c0_i32_0 : i32, i32
  }
  func.func @transform_6(%arg0: i32, %arg1: i32) -> (i32, i32) {
    %c0_i32 = arith.constant 0 : i32
    %c0_i32_0 = arith.constant 0 : i32
    %c0_i32_1 = arith.constant 0 : i32
    return %c0_i32, %c0_i32_0 : i32, i32
  }
  func.func @transform_7(%arg0: i32, %arg1: i32) -> (i32, i32) {
    %c0_i32 = arith.constant 0 : i32
    %c0_i32_0 = arith.constant 0 : i32
    %c0_i32_1 = arith.constant 0 : i32
    return %c0_i32, %c0_i32_0 : i32, i32
  }
  func.func @transform_8(%arg0: i32, %arg1: i32) -> (i32, i32) {
    %c0_i32 = arith.constant 0 : i32
    %c0_i32_0 = arith.constant 0 : i32
    %c0_i32_1 = arith.constant 0 : i32
    return %c0_i32, %c0_i32_0 : i32, i32
  }
  func.func @transform_9(%arg0: i32, %arg1: i32) -> (i32, i32) {
    %c0_i32 = arith.constant 0 : i32
    %c0_i32_0 = arith.constant 0 : i32
    %c0_i32_1 = arith.constant 0 : i32
    return %c0_i32, %c0_i32_0 : i32, i32
  }
  func.func @transform_10(%arg0: i32, %arg1: i32) -> (i32, i32) {
    %c0_i32 = arith.constant 0 : i32
    %c0_i32_0 = arith.constant 0 : i32
    %c0_i32_1 = arith.constant 0 : i32
    return %c0_i32, %c0_i32_0 : i32, i32
  }
  func.func @transform_11(%arg0: i32, %arg1: i32) -> (i32, i32, i32) {
    %c0_i32 = arith.constant 0 : i32
    %c0_i32_0 = arith.constant 0 : i32
    return %arg0, %arg1, %c0_i32 : i32, i32, i32
  }
}

module attributes {stable_mosaic.version = 11 : i64} {
  func.func @_rab_kernel(%arg0: i32, %arg1: i32, %arg2: memref<1x8x32xf32, #tpu.memory_space<vmem>>, %arg3: memref<1x32xf32, #tpu.memory_space<vmem>>, %arg4: memref<1x32xf32, #tpu.memory_space<vmem>>, %arg5: memref<32x32xbf16, #tpu.memory_space<vmem>>, %arg6: memref<32x32xbf16, #tpu.memory_space<vmem>>, %arg7: memref<32x32xbf16, #tpu.memory_space<vmem>>, %arg8: memref<1x32xf32, #tpu.memory_space<vmem>>, %arg9: memref<1x32xf32, #tpu.memory_space<vmem>>, %arg10: memref<1x32xf32, #tpu.memory_space<vmem>>, %arg11: memref<32x32xbf16, #tpu.memory_space<vmem>>, %arg12: memref<1x32xf32, #tpu.memory_space<vmem>>, %arg13: memref<1x8x32xf32, #tpu.memory_space<vmem>>, %arg14: memref<4x8x8xbf16, #tpu.memory_space<vmem>>, %arg15: memref<4x8x8xbf16, #tpu.memory_space<vmem>>, %arg16: memref<4x8x8xbf16, #tpu.memory_space<vmem>>, %arg17: memref<4x8x8xbf16, #tpu.memory_space<vmem>>, %arg18: memref<8x32xbf16, #tpu.memory_space<vmem>>) attributes {dimension_semantics = [#tpu.dimension_semantics<parallel>, #tpu.dimension_semantics<arbitrary>], iteration_bounds = array<i64: 2, 1>, scalar_prefetch = 0 : i64, scratch_operands = 5 : i64, tpu.core_type = #tpu.core_type<tc>, window_params = [{transform_indices = @transform_0, window_bounds = array<i64: 1, 8, 32>}, {pipeline_mode = #tpu.pipeline_mode<synchronous>, transform_indices = @transform_1, window_bounds = array<i64: 1, 32>}, {pipeline_mode = #tpu.pipeline_mode<synchronous>, transform_indices = @transform_2, window_bounds = array<i64: 1, 32>}, {pipeline_mode = #tpu.pipeline_mode<synchronous>, transform_indices = @transform_3, window_bounds = array<i64: 32, 32>}, {pipeline_mode = #tpu.pipeline_mode<synchronous>, transform_indices = @transform_4, window_bounds = array<i64: 32, 32>}, {pipeline_mode = #tpu.pipeline_mode<synchronous>, transform_indices = @transform_5, window_bounds = array<i64: 32, 32>}, {pipeline_mode = #tpu.pipeline_mode<synchronous>, transform_indices = @transform_6, window_bounds = array<i64: 1, 32>}, {pipeline_mode = #tpu.pipeline_mode<synchronous>, transform_indices = @transform_7, window_bounds = array<i64: 1, 32>}, {pipeline_mode = #tpu.pipeline_mode<synchronous>, transform_indices = @transform_8, window_bounds = array<i64: 1, 32>}, {pipeline_mode = #tpu.pipeline_mode<synchronous>, transform_indices = @transform_9, window_bounds = array<i64: 32, 32>}, {pipeline_mode = #tpu.pipeline_mode<synchronous>, transform_indices = @transform_10, window_bounds = array<i64: 1, 32>}, {transform_indices = @transform_11, window_bounds = array<i64: 1, 8, 32>}]} {
    %c0 = arith.constant 0 : index
    %c0_0 = arith.constant 0 : index
    %0 = vector.load %arg3[%c0, %c0_0] : memref<1x32xf32, #tpu.memory_space<vmem>>, vector<1x32xf32>
    %c0_1 = arith.constant 0 : index
    %c0_2 = arith.constant 0 : index
    %1 = vector.load %arg4[%c0_1, %c0_2] : memref<1x32xf32, #tpu.memory_space<vmem>>, vector<1x32xf32>
    %c0_i32 = arith.constant 0 : i32
    %2 = arith.cmpi eq, %arg1, %c0_i32 : i32
    %3 = arith.extui %2 : i1 to i32
    %c0_i32_3 = arith.constant 0 : i32
    %4 = arith.cmpi ne, %3, %c0_i32_3 : i32
    scf.if %4 {
      %c0_53 = arith.constant 0 : index
      %c0_54 = arith.constant 0 : index
      %78 = vector.load %arg6[%c0_53, %c0_54] : memref<32x32xbf16, #tpu.memory_space<vmem>>, vector<32x32xbf16>
      %c0_55 = arith.constant 0 : index
      %c0_56 = arith.constant 0 : index
      %79 = vector.load %arg7[%c0_55, %c0_56] : memref<32x32xbf16, #tpu.memory_space<vmem>>, vector<32x32xbf16>
      %c0_57 = arith.constant 0 : index
      %c0_58 = arith.constant 0 : index
      %80 = vector.load %arg9[%c0_57, %c0_58] : memref<1x32xf32, #tpu.memory_space<vmem>>, vector<1x32xf32>
      %c0_59 = arith.constant 0 : index
      %c0_60 = arith.constant 0 : index
      %81 = vector.load %arg10[%c0_59, %c0_60] : memref<1x32xf32, #tpu.memory_space<vmem>>, vector<1x32xf32>
      %c0_i32_61 = arith.constant 0 : i32
      %c8_i32_62 = arith.constant 8 : i32
      %82 = arith.muli %c0_i32_61, %c8_i32_62 : i32
      %83 = tpu.assume_multiple %82, 8 : i32
      %c0_63 = arith.constant 0 : index
      %84 = arith.index_cast %83 : i32 to index
      %c0_64 = arith.constant 0 : index
      %85 = vector.load %arg2[%c0_63, %84, %c0_64] : memref<1x8x32xf32, #tpu.memory_space<vmem>>, vector<1x8x32xf32>
      %86 = vector.shape_cast %85 : vector<1x8x32xf32> to vector<8x32xf32>
      %cst_65 = arith.constant dense<0.000000e+00> : vector<8xf32>
      %87 = vector.multi_reduction <add>, %86, %cst_65 [1] : vector<8x32xf32> to vector<8xf32>
      %88 = vector.shape_cast %87 : vector<8xf32> to vector<8x1xf32>
      %cst_66 = arith.constant 3.200000e+01 : f32
      %89 = vector.broadcast %cst_66 : f32 to vector<8x1xf32>
      %90 = arith.divf %88, %89 : vector<8x1xf32>
      %91 = vector.broadcast %90 : vector<8x1xf32> to vector<8x32xf32>
      %92 = arith.subf %86, %91 : vector<8x32xf32>
      %93 = arith.mulf %92, %92 : vector<8x32xf32>
      %cst_67 = arith.constant dense<0.000000e+00> : vector<8xf32>
      %94 = vector.multi_reduction <add>, %93, %cst_67 [1] : vector<8x32xf32> to vector<8xf32>
      %95 = vector.shape_cast %94 : vector<8xf32> to vector<8x1xf32>
      %cst_68 = arith.constant 3.200000e+01 : f32
      %96 = vector.broadcast %cst_68 : f32 to vector<8x1xf32>
      %97 = arith.divf %95, %96 : vector<8x1xf32>
      %98 = vector.broadcast %90 : vector<8x1xf32> to vector<8x32xf32>
      %99 = arith.subf %86, %98 : vector<8x32xf32>
      %cst_69 = arith.constant 9.99999974E-6 : f32
      %100 = vector.broadcast %cst_69 : f32 to vector<8x1xf32>
      %101 = arith.addf %97, %100 : vector<8x1xf32>
      %102 = math.rsqrt %101 : vector<8x1xf32>
      %103 = vector.broadcast %102 : vector<8x1xf32> to vector<8x32xf32>
      %104 = arith.mulf %99, %103 : vector<8x32xf32>
      %105 = vector.broadcast %0 : vector<1x32xf32> to vector<8x32xf32>
      %106 = arith.mulf %104, %105 : vector<8x32xf32>
      %107 = vector.broadcast %1 : vector<1x32xf32> to vector<8x32xf32>
      %108 = arith.addf %106, %107 : vector<8x32xf32>
      %109 = arith.truncf %108 : vector<8x32xf32> to vector<8x32xbf16>
      %cst_70 = arith.constant dense<0.000000e+00> : vector<8x32xf32>
      %110 = tpu.matmul %109, %78, %cst_70 {dimension_numbers = #tpu.dot_dimension_numbers<[1], [0], [0], [1], [0, 0, 1, 1], [], []>} : vector<8x32xbf16>, vector<32x32xbf16>, vector<8x32xf32> -> vector<8x32xf32>
      %111 = vector.broadcast %80 : vector<1x32xf32> to vector<8x32xf32>
      %112 = arith.addf %110, %111 : vector<8x32xf32>
      %113 = arith.truncf %112 : vector<8x32xf32> to vector<8x32xbf16>
      %cst_71 = arith.constant dense<0.000000e+00> : vector<8x32xf32>
      %114 = tpu.matmul %109, %79, %cst_71 {dimension_numbers = #tpu.dot_dimension_numbers<[1], [0], [0], [1], [0, 0, 1, 1], [], []>} : vector<8x32xbf16>, vector<32x32xbf16>, vector<8x32xf32> -> vector<8x32xf32>
      %115 = vector.broadcast %81 : vector<1x32xf32> to vector<8x32xf32>
      %116 = arith.addf %114, %115 : vector<8x32xf32>
      %117 = arith.truncf %116 : vector<8x32xf32> to vector<8x32xbf16>
      %118 = vector.extract_strided_slice %113 {offsets = [0, 0], sizes = [8, 8], strides = [1, 1]} : vector<8x32xbf16> to vector<8x8xbf16>
      %c0_72 = arith.constant 0 : index
      %119 = arith.index_cast %83 : i32 to index
      %c0_73 = arith.constant 0 : index
      %120 = vector.load %arg14[%c0_72, %119, %c0_73] : memref<4x8x8xbf16, #tpu.memory_space<vmem>>, vector<1x8x8xbf16>
      %121 = vector.shape_cast %120 : vector<1x8x8xbf16> to vector<8x8xbf16>
      %122 = vector.shape_cast %118 : vector<8x8xbf16> to vector<1x8x8xbf16>
      tpu.vector_store %arg14[%c0_72, %119, %c0_73], %122 {strides = array<i32>} : memref<4x8x8xbf16, #tpu.memory_space<vmem>>, vector<1x8x8xbf16>,
      %123 = vector.extract_strided_slice %117 {offsets = [0, 0], sizes = [8, 8], strides = [1, 1]} : vector<8x32xbf16> to vector<8x8xbf16>
      %c0_74 = arith.constant 0 : index
      %124 = arith.index_cast %83 : i32 to index
      %c0_75 = arith.constant 0 : index
      %125 = vector.load %arg15[%c0_74, %124, %c0_75] : memref<4x8x8xbf16, #tpu.memory_space<vmem>>, vector<1x8x8xbf16>
      %126 = vector.shape_cast %125 : vector<1x8x8xbf16> to vector<8x8xbf16>
      %127 = vector.shape_cast %123 : vector<8x8xbf16> to vector<1x8x8xbf16>
      tpu.vector_store %arg15[%c0_74, %124, %c0_75], %127 {strides = array<i32>} : memref<4x8x8xbf16, #tpu.memory_space<vmem>>, vector<1x8x8xbf16>,
      %128 = vector.extract_strided_slice %113 {offsets = [0, 8], sizes = [8, 8], strides = [1, 1]} : vector<8x32xbf16> to vector<8x8xbf16>
      %c1_76 = arith.constant 1 : index
      %129 = arith.index_cast %83 : i32 to index
      %c0_77 = arith.constant 0 : index
      %130 = vector.load %arg14[%c1_76, %129, %c0_77] : memref<4x8x8xbf16, #tpu.memory_space<vmem>>, vector<1x8x8xbf16>
      %131 = vector.shape_cast %130 : vector<1x8x8xbf16> to vector<8x8xbf16>
      %132 = vector.shape_cast %128 : vector<8x8xbf16> to vector<1x8x8xbf16>
      tpu.vector_store %arg14[%c1_76, %129, %c0_77], %132 {strides = array<i32>} : memref<4x8x8xbf16, #tpu.memory_space<vmem>>, vector<1x8x8xbf16>,
      %133 = vector.extract_strided_slice %117 {offsets = [0, 8], sizes = [8, 8], strides = [1, 1]} : vector<8x32xbf16> to vector<8x8xbf16>
      %c1_78 = arith.constant 1 : index
      %134 = arith.index_cast %83 : i32 to index
      %c0_79 = arith.constant 0 : index
      %135 = vector.load %arg15[%c1_78, %134, %c0_79] : memref<4x8x8xbf16, #tpu.memory_space<vmem>>, vector<1x8x8xbf16>
      %136 = vector.shape_cast %135 : vector<1x8x8xbf16> to vector<8x8xbf16>
      %137 = vector.shape_cast %133 : vector<8x8xbf16> to vector<1x8x8xbf16>
      tpu.vector_store %arg15[%c1_78, %134, %c0_79], %137 {strides = array<i32>} : memref<4x8x8xbf16, #tpu.memory_space<vmem>>, vector<1x8x8xbf16>,
      %138 = vector.extract_strided_slice %113 {offsets = [0, 16], sizes = [8, 8], strides = [1, 1]} : vector<8x32xbf16> to vector<8x8xbf16>
      %c2_80 = arith.constant 2 : index
      %139 = arith.index_cast %83 : i32 to index
      %c0_81 = arith.constant 0 : index
      %140 = vector.load %arg14[%c2_80, %139, %c0_81] : memref<4x8x8xbf16, #tpu.memory_space<vmem>>, vector<1x8x8xbf16>
      %141 = vector.shape_cast %140 : vector<1x8x8xbf16> to vector<8x8xbf16>
      %142 = vector.shape_cast %138 : vector<8x8xbf16> to vector<1x8x8xbf16>
      tpu.vector_store %arg14[%c2_80, %139, %c0_81], %142 {strides = array<i32>} : memref<4x8x8xbf16, #tpu.memory_space<vmem>>, vector<1x8x8xbf16>,
      %143 = vector.extract_strided_slice %117 {offsets = [0, 16], sizes = [8, 8], strides = [1, 1]} : vector<8x32xbf16> to vector<8x8xbf16>
      %c2_82 = arith.constant 2 : index
      %144 = arith.index_cast %83 : i32 to index
      %c0_83 = arith.constant 0 : index
      %145 = vector.load %arg15[%c2_82, %144, %c0_83] : memref<4x8x8xbf16, #tpu.memory_space<vmem>>, vector<1x8x8xbf16>
      %146 = vector.shape_cast %145 : vector<1x8x8xbf16> to vector<8x8xbf16>
      %147 = vector.shape_cast %143 : vector<8x8xbf16> to vector<1x8x8xbf16>
      tpu.vector_store %arg15[%c2_82, %144, %c0_83], %147 {strides = array<i32>} : memref<4x8x8xbf16, #tpu.memory_space<vmem>>, vector<1x8x8xbf16>,
      %148 = vector.extract_strided_slice %113 {offsets = [0, 24], sizes = [8, 8], strides = [1, 1]} : vector<8x32xbf16> to vector<8x8xbf16>
      %c3_84 = arith.constant 3 : index
      %149 = arith.index_cast %83 : i32 to index
      %c0_85 = arith.constant 0 : index
      %150 = vector.load %arg14[%c3_84, %149, %c0_85] : memref<4x8x8xbf16, #tpu.memory_space<vmem>>, vector<1x8x8xbf16>
      %151 = vector.shape_cast %150 : vector<1x8x8xbf16> to vector<8x8xbf16>
      %152 = vector.shape_cast %148 : vector<8x8xbf16> to vector<1x8x8xbf16>
      tpu.vector_store %arg14[%c3_84, %149, %c0_85], %152 {strides = array<i32>} : memref<4x8x8xbf16, #tpu.memory_space<vmem>>, vector<1x8x8xbf16>,
      %153 = vector.extract_strided_slice %117 {offsets = [0, 24], sizes = [8, 8], strides = [1, 1]} : vector<8x32xbf16> to vector<8x8xbf16>
      %c3_86 = arith.constant 3 : index
      %154 = arith.index_cast %83 : i32 to index
      %c0_87 = arith.constant 0 : index
      %155 = vector.load %arg15[%c3_86, %154, %c0_87] : memref<4x8x8xbf16, #tpu.memory_space<vmem>>, vector<1x8x8xbf16>
      %156 = vector.shape_cast %155 : vector<1x8x8xbf16> to vector<8x8xbf16>
      %157 = vector.shape_cast %153 : vector<8x8xbf16> to vector<1x8x8xbf16>
      tpu.vector_store %arg15[%c3_86, %154, %c0_87], %157 {strides = array<i32>} : memref<4x8x8xbf16, #tpu.memory_space<vmem>>, vector<1x8x8xbf16>,
      %c1_i32_88 = arith.constant 1 : i32
    } else {
    }
    %c8_i32 = arith.constant 8 : i32
    %5 = arith.muli %arg1, %c8_i32 : i32
    %6 = tpu.assume_multiple %5, 8 : i32
    %c0_4 = arith.constant 0 : index
    %7 = arith.index_cast %6 : i32 to index
    %c0_5 = arith.constant 0 : index
    %8 = vector.load %arg2[%c0_4, %7, %c0_5] : memref<1x8x32xf32, #tpu.memory_space<vmem>>, vector<1x8x32xf32>
    %9 = vector.shape_cast %8 : vector<1x8x32xf32> to vector<8x32xf32>
    %cst = arith.constant dense<0.000000e+00> : vector<8xf32>
    %10 = vector.multi_reduction <add>, %9, %cst [1] : vector<8x32xf32> to vector<8xf32>
    %11 = vector.shape_cast %10 : vector<8xf32> to vector<8x1xf32>
    %cst_6 = arith.constant 3.200000e+01 : f32
    %12 = vector.broadcast %cst_6 : f32 to vector<8x1xf32>
    %13 = arith.divf %11, %12 : vector<8x1xf32>
    %14 = vector.broadcast %13 : vector<8x1xf32> to vector<8x32xf32>
    %15 = arith.subf %9, %14 : vector<8x32xf32>
    %16 = arith.mulf %15, %15 : vector<8x32xf32>
    %cst_7 = arith.constant dense<0.000000e+00> : vector<8xf32>
    %17 = vector.multi_reduction <add>, %16, %cst_7 [1] : vector<8x32xf32> to vector<8xf32>
    %18 = vector.shape_cast %17 : vector<8xf32> to vector<8x1xf32>
    %cst_8 = arith.constant 3.200000e+01 : f32
    %19 = vector.broadcast %cst_8 : f32 to vector<8x1xf32>
    %20 = arith.divf %18, %19 : vector<8x1xf32>
    %21 = vector.broadcast %13 : vector<8x1xf32> to vector<8x32xf32>
    %22 = arith.subf %9, %21 : vector<8x32xf32>
    %cst_9 = arith.constant 9.99999974E-6 : f32
    %23 = vector.broadcast %cst_9 : f32 to vector<8x1xf32>
    %24 = arith.addf %20, %23 : vector<8x1xf32>
    %25 = math.rsqrt %24 : vector<8x1xf32>
    %26 = vector.broadcast %25 : vector<8x1xf32> to vector<8x32xf32>
    %27 = arith.mulf %22, %26 : vector<8x32xf32>
    %28 = vector.broadcast %0 : vector<1x32xf32> to vector<8x32xf32>
    %29 = arith.mulf %27, %28 : vector<8x32xf32>
    %30 = vector.broadcast %1 : vector<1x32xf32> to vector<8x32xf32>
    %31 = arith.addf %29, %30 : vector<8x32xf32>
    %32 = arith.truncf %31 : vector<8x32xf32> to vector<8x32xbf16>
    %c0_10 = arith.constant 0 : index
    %c0_11 = arith.constant 0 : index
    %33 = vector.load %arg5[%c0_10, %c0_11] : memref<32x32xbf16, #tpu.memory_space<vmem>>, vector<32x32xbf16>
    %cst_12 = arith.constant dense<0.000000e+00> : vector<8x32xf32>
    %34 = tpu.matmul %32, %33, %cst_12 {dimension_numbers = #tpu.dot_dimension_numbers<[1], [0], [0], [1], [0, 0, 1, 1], [], []>} : vector<8x32xbf16>, vector<32x32xbf16>, vector<8x32xf32> -> vector<8x32xf32>
    %c0_13 = arith.constant 0 : index
    %c0_14 = arith.constant 0 : index
    %35 = vector.load %arg8[%c0_13, %c0_14] : memref<1x32xf32, #tpu.memory_space<vmem>>, vector<1x32xf32>
    %36 = vector.broadcast %35 : vector<1x32xf32> to vector<8x32xf32>
    %37 = arith.addf %34, %36 : vector<8x32xf32>
    %38 = arith.truncf %37 : vector<8x32xf32> to vector<8x32xbf16>
    %39 = vector.extract_strided_slice %38 {offsets = [0, 0], sizes = [8, 8], strides = [1, 1]} : vector<8x32xbf16> to vector<8x8xbf16>
    %c0_15 = arith.constant 0 : index
    %c0_16 = arith.constant 0 : index
    %c0_17 = arith.constant 0 : index
    %40 = vector.load %arg16[%c0_15, %c0_16, %c0_17] : memref<4x8x8xbf16, #tpu.memory_space<vmem>>, vector<1x8x8xbf16>
    %41 = vector.shape_cast %40 : vector<1x8x8xbf16> to vector<8x8xbf16>
    %42 = vector.shape_cast %39 : vector<8x8xbf16> to vector<1x8x8xbf16>
    tpu.vector_store %arg16[%c0_15, %c0_16, %c0_17], %42 {strides = array<i32>} : memref<4x8x8xbf16, #tpu.memory_space<vmem>>, vector<1x8x8xbf16>,
    %43 = vector.extract_strided_slice %38 {offsets = [0, 8], sizes = [8, 8], strides = [1, 1]} : vector<8x32xbf16> to vector<8x8xbf16>
    %c1 = arith.constant 1 : index
    %c0_18 = arith.constant 0 : index
    %c0_19 = arith.constant 0 : index
    %44 = vector.load %arg16[%c1, %c0_18, %c0_19] : memref<4x8x8xbf16, #tpu.memory_space<vmem>>, vector<1x8x8xbf16>
    %45 = vector.shape_cast %44 : vector<1x8x8xbf16> to vector<8x8xbf16>
    %46 = vector.shape_cast %43 : vector<8x8xbf16> to vector<1x8x8xbf16>
    tpu.vector_store %arg16[%c1, %c0_18, %c0_19], %46 {strides = array<i32>} : memref<4x8x8xbf16, #tpu.memory_space<vmem>>, vector<1x8x8xbf16>,
    %47 = vector.extract_strided_slice %38 {offsets = [0, 16], sizes = [8, 8], strides = [1, 1]} : vector<8x32xbf16> to vector<8x8xbf16>
    %c2 = arith.constant 2 : index
    %c0_20 = arith.constant 0 : index
    %c0_21 = arith.constant 0 : index
    %48 = vector.load %arg16[%c2, %c0_20, %c0_21] : memref<4x8x8xbf16, #tpu.memory_space<vmem>>, vector<1x8x8xbf16>
    %49 = vector.shape_cast %48 : vector<1x8x8xbf16> to vector<8x8xbf16>
    %50 = vector.shape_cast %47 : vector<8x8xbf16> to vector<1x8x8xbf16>
    tpu.vector_store %arg16[%c2, %c0_20, %c0_21], %50 {strides = array<i32>} : memref<4x8x8xbf16, #tpu.memory_space<vmem>>, vector<1x8x8xbf16>,
    %51 = vector.extract_strided_slice %38 {offsets = [0, 24], sizes = [8, 8], strides = [1, 1]} : vector<8x32xbf16> to vector<8x8xbf16>
    %c3 = arith.constant 3 : index
    %c0_22 = arith.constant 0 : index
    %c0_23 = arith.constant 0 : index
    %52 = vector.load %arg16[%c3, %c0_22, %c0_23] : memref<4x8x8xbf16, #tpu.memory_space<vmem>>, vector<1x8x8xbf16>
    %53 = vector.shape_cast %52 : vector<1x8x8xbf16> to vector<8x8xbf16>
    %54 = vector.shape_cast %51 : vector<8x8xbf16> to vector<1x8x8xbf16>
    tpu.vector_store %arg16[%c3, %c0_22, %c0_23], %54 {strides = array<i32>} : memref<4x8x8xbf16, #tpu.memory_space<vmem>>, vector<1x8x8xbf16>,
    %c0_i32_24 = arith.constant 0 : i32
    %c4_i32 = arith.constant 4 : i32
    %55 = arith.addi %c0_i32_24, %c4_i32 : i32
    %c1_i32 = arith.constant 1 : i32
    scf.for %arg19 = %c0_i32_24 to %55 step %c1_i32  : i32 {
      %78 = arith.index_cast %arg19 : i32 to index
      %c0_53 = arith.constant 0 : index
      %c0_54 = arith.constant 0 : index
      %79 = vector.load %arg16[%78, %c0_53, %c0_54] : memref<4x8x8xbf16, #tpu.memory_space<vmem>>, vector<1x8x8xbf16>
      %80 = vector.shape_cast %79 : vector<1x8x8xbf16> to vector<8x8xbf16>
      %81 = arith.index_cast %arg19 : i32 to index
      %c0_55 = arith.constant 0 : index
      %c0_56 = arith.constant 0 : index
      %82 = vector.load %arg14[%81, %c0_55, %c0_56] : memref<4x8x8xbf16, #tpu.memory_space<vmem>>, vector<1x8x8xbf16>
      %83 = vector.shape_cast %82 : vector<1x8x8xbf16> to vector<8x8xbf16>
      %84 = arith.index_cast %arg19 : i32 to index
      %c0_57 = arith.constant 0 : index
      %c0_58 = arith.constant 0 : index
      %85 = vector.load %arg15[%84, %c0_57, %c0_58] : memref<4x8x8xbf16, #tpu.memory_space<vmem>>, vector<1x8x8xbf16>
      %86 = vector.shape_cast %85 : vector<1x8x8xbf16> to vector<8x8xbf16>
      %cst_59 = arith.constant dense<0.000000e+00> : vector<8x8xf32>
      %87 = tpu.matmul %80, %83, %cst_59 {dimension_numbers = #tpu.dot_dimension_numbers<[1], [1], [0], [0], [0, 0, 1, 0], [], []>} : vector<8x8xbf16>, vector<8x8xbf16>, vector<8x8xf32> -> vector<8x8xf32>
      %cst_60 = arith.constant dense<0xFF800000> : vector<8xf32>
      %88 = vector.multi_reduction <maximumf>, %87, %cst_60 [1] : vector<8x8xf32> to vector<8xf32>
      %89 = vector.shape_cast %88 : vector<8xf32> to vector<8x1xf32>
      %90 = vector.broadcast %89 : vector<8x1xf32> to vector<8x8xf32>
      %91 = arith.subf %87, %90 : vector<8x8xf32>
      %92 = math.exp %91 : vector<8x8xf32>
      %cst_61 = arith.constant dense<0.000000e+00> : vector<8xf32>
      %93 = vector.multi_reduction <add>, %92, %cst_61 [1] : vector<8x8xf32> to vector<8xf32>
      %94 = vector.shape_cast %93 : vector<8xf32> to vector<8x1xf32>
      %95 = tpu.reciprocal %94 {approx = true} : vector<8x1xf32> -> vector<8x1xf32>
      %96 = vector.broadcast %95 : vector<8x1xf32> to vector<8x8xf32>
      %97 = arith.mulf %92, %96 : vector<8x8xf32>
      %98 = arith.truncf %97 : vector<8x8xf32> to vector<8x8xbf16>
      %cst_62 = arith.constant dense<0.000000e+00> : vector<8x8xf32>
      %99 = tpu.matmul %98, %86, %cst_62 {dimension_numbers = #tpu.dot_dimension_numbers<[1], [0], [0], [1], [0, 0, 1, 1], [], []>} : vector<8x8xbf16>, vector<8x8xbf16>, vector<8x8xf32> -> vector<8x8xf32>
      %100 = arith.truncf %99 : vector<8x8xf32> to vector<8x8xbf16>
      %101 = arith.index_cast %arg19 : i32 to index
      %c0_63 = arith.constant 0 : index
      %c0_64 = arith.constant 0 : index
      %102 = vector.load %arg17[%101, %c0_63, %c0_64] : memref<4x8x8xbf16, #tpu.memory_space<vmem>>, vector<1x8x8xbf16>
      %103 = vector.shape_cast %102 : vector<1x8x8xbf16> to vector<8x8xbf16>
      %104 = vector.shape_cast %100 : vector<8x8xbf16> to vector<1x8x8xbf16>
      tpu.vector_store %arg17[%101, %c0_63, %c0_64], %104 {strides = array<i32>} : memref<4x8x8xbf16, #tpu.memory_space<vmem>>, vector<1x8x8xbf16>,
    }
    %c4_i32_25 = arith.constant 4 : i32
    %c0_26 = arith.constant 0 : index
    %c0_27 = arith.constant 0 : index
    %c0_28 = arith.constant 0 : index
    %56 = vector.load %arg17[%c0_26, %c0_27, %c0_28] : memref<4x8x8xbf16, #tpu.memory_space<vmem>>, vector<1x8x8xbf16>
    %57 = vector.shape_cast %56 : vector<1x8x8xbf16> to vector<8x8xbf16>
    %c0_29 = arith.constant 0 : index
    %c0_30 = arith.constant 0 : index
    %58 = vector.load %arg18[%c0_29, %c0_30] : memref<8x32xbf16, #tpu.memory_space<vmem>>, vector<8x8xbf16>
    tpu.vector_store %arg18[%c0_29, %c0_30], %57 {strides = array<i32>} : memref<8x32xbf16, #tpu.memory_space<vmem>>, vector<8x8xbf16>,
    %c1_31 = arith.constant 1 : index
    %c0_32 = arith.constant 0 : index
    %c0_33 = arith.constant 0 : index
    %59 = vector.load %arg17[%c1_31, %c0_32, %c0_33] : memref<4x8x8xbf16, #tpu.memory_space<vmem>>, vector<1x8x8xbf16>
    %60 = vector.shape_cast %59 : vector<1x8x8xbf16> to vector<8x8xbf16>
    %c0_34 = arith.constant 0 : index
    %c8 = arith.constant 8 : index
    %61 = vector.load %arg18[%c0_34, %c8] : memref<8x32xbf16, #tpu.memory_space<vmem>>, vector<8x8xbf16>
    tpu.vector_store %arg18[%c0_34, %c8], %60 {strides = array<i32>} : memref<8x32xbf16, #tpu.memory_space<vmem>>, vector<8x8xbf16>,
    %c2_35 = arith.constant 2 : index
    %c0_36 = arith.constant 0 : index
    %c0_37 = arith.constant 0 : index
    %62 = vector.load %arg17[%c2_35, %c0_36, %c0_37] : memref<4x8x8xbf16, #tpu.memory_space<vmem>>, vector<1x8x8xbf16>
    %63 = vector.shape_cast %62 : vector<1x8x8xbf16> to vector<8x8xbf16>
    %c0_38 = arith.constant 0 : index
    %c16 = arith.constant 16 : index
    %64 = vector.load %arg18[%c0_38, %c16] : memref<8x32xbf16, #tpu.memory_space<vmem>>, vector<8x8xbf16>
    tpu.vector_store %arg18[%c0_38, %c16], %63 {strides = array<i32>} : memref<8x32xbf16, #tpu.memory_space<vmem>>, vector<8x8xbf16>,
    %c3_39 = arith.constant 3 : index
    %c0_40 = arith.constant 0 : index
    %c0_41 = arith.constant 0 : index
    %65 = vector.load %arg17[%c3_39, %c0_40, %c0_41] : memref<4x8x8xbf16, #tpu.memory_space<vmem>>, vector<1x8x8xbf16>
    %66 = vector.shape_cast %65 : vector<1x8x8xbf16> to vector<8x8xbf16>
    %c0_42 = arith.constant 0 : index
    %c24 = arith.constant 24 : index
    %67 = vector.load %arg18[%c0_42, %c24] : memref<8x32xbf16, #tpu.memory_space<vmem>>, vector<8x8xbf16>
    tpu.vector_store %arg18[%c0_42, %c24], %66 {strides = array<i32>} : memref<8x32xbf16, #tpu.memory_space<vmem>>, vector<8x8xbf16>,
    %c0_43 = arith.constant 0 : index
    %c0_44 = arith.constant 0 : index
    %68 = vector.load %arg18[%c0_43, %c0_44] : memref<8x32xbf16, #tpu.memory_space<vmem>>, vector<8x32xbf16>
    %c0_45 = arith.constant 0 : index
    %c0_46 = arith.constant 0 : index
    %69 = vector.load %arg11[%c0_45, %c0_46] : memref<32x32xbf16, #tpu.memory_space<vmem>>, vector<32x32xbf16>
    %cst_47 = arith.constant dense<0.000000e+00> : vector<8x32xf32>
    %70 = tpu.matmul %68, %69, %cst_47 {dimension_numbers = #tpu.dot_dimension_numbers<[1], [0], [0], [1], [0, 0, 1, 1], [], []>} : vector<8x32xbf16>, vector<32x32xbf16>, vector<8x32xf32> -> vector<8x32xf32>
    %c0_48 = arith.constant 0 : index
    %c0_49 = arith.constant 0 : index
    %71 = vector.load %arg12[%c0_48, %c0_49] : memref<1x32xf32, #tpu.memory_space<vmem>>, vector<1x32xf32>
    %72 = vector.broadcast %71 : vector<1x32xf32> to vector<8x32xf32>
    %73 = arith.addf %70, %72 : vector<8x32xf32>
    %74 = arith.addf %73, %9 : vector<8x32xf32>
    %c0_50 = arith.constant 0 : index
    %c0_51 = arith.constant 0 : index
    %c0_52 = arith.constant 0 : index
    %75 = vector.load %arg13[%c0_50, %c0_51, %c0_52] : memref<1x8x32xf32, #tpu.memory_space<vmem>>, vector<1x8x32xf32>
    %76 = vector.shape_cast %75 : vector<1x8x32xf32> to vector<8x32xf32>
    %77 = vector.shape_cast %74 : vector<8x32xf32> to vector<1x8x32xf32>
    tpu.vector_store %arg13[%c0_50, %c0_51, %c0_52], %77 {strides = array<i32>} : memref<1x8x32xf32, #tpu.memory_space<vmem>>, vector<1x8x32xf32>,
    return
  }
  func.func @transform_0(%arg0: i32, %arg1: i32) -> (i32, i32, i32) {
    %c0_i32 = arith.constant 0 : i32
    %c0_i32_0 = arith.constant 0 : i32
    %c0_i32_1 = arith.constant 0 : i32
    return %arg0, %c0_i32, %c0_i32_0 : i32, i32, i32
  }
  func.func @transform_1(%arg0: i32, %arg1: i32) -> (i32, i32) {
    %c0_i32 = arith.constant 0 : i32
    %c0_i32_0 = arith.constant 0 : i32
    %c0_i32_1 = arith.constant 0 : i32
    return %c0_i32, %c0_i32_0 : i32, i32
  }
  func.func @transform_2(%arg0: i32, %arg1: i32) -> (i32, i32) {
    %c0_i32 = arith.constant 0 : i32
    %c0_i32_0 = arith.constant 0 : i32
    %c0_i32_1 = arith.constant 0 : i32
    return %c0_i32, %c0_i32_0 : i32, i32
  }
  func.func @transform_3(%arg0: i32, %arg1: i32) -> (i32, i32) {
    %c0_i32 = arith.constant 0 : i32
    %c0_i32_0 = arith.constant 0 : i32
    %c0_i32_1 = arith.constant 0 : i32
    return %c0_i32, %c0_i32_0 : i32, i32
  }
  func.func @transform_4(%arg0: i32, %arg1: i32) -> (i32, i32) {
    %c0_i32 = arith.constant 0 : i32
    %c0_i32_0 = arith.constant 0 : i32
    %c0_i32_1 = arith.constant 0 : i32
    return %c0_i32, %c0_i32_0 : i32, i32
  }
  func.func @transform_5(%arg0: i32, %arg1: i32) -> (i32, i32) {
    %c0_i32 = arith.constant 0 : i32
    %c0_i32_0 = arith.constant 0 : i32
    %c0_i32_1 = arith.constant 0 : i32
    return %c0_i32, %c0_i32_0 : i32, i32
  }
  func.func @transform_6(%arg0: i32, %arg1: i32) -> (i32, i32) {
    %c0_i32 = arith.constant 0 : i32
    %c0_i32_0 = arith.constant 0 : i32
    %c0_i32_1 = arith.constant 0 : i32
    return %c0_i32, %c0_i32_0 : i32, i32
  }
  func.func @transform_7(%arg0: i32, %arg1: i32) -> (i32, i32) {
    %c0_i32 = arith.constant 0 : i32
    %c0_i32_0 = arith.constant 0 : i32
    %c0_i32_1 = arith.constant 0 : i32
    return %c0_i32, %c0_i32_0 : i32, i32
  }
  func.func @transform_8(%arg0: i32, %arg1: i32) -> (i32, i32) {
    %c0_i32 = arith.constant 0 : i32
    %c0_i32_0 = arith.constant 0 : i32
    %c0_i32_1 = arith.constant 0 : i32
    return %c0_i32, %c0_i32_0 : i32, i32
  }
  func.func @transform_9(%arg0: i32, %arg1: i32) -> (i32, i32) {
    %c0_i32 = arith.constant 0 : i32
    %c0_i32_0 = arith.constant 0 : i32
    %c0_i32_1 = arith.constant 0 : i32
    return %c0_i32, %c0_i32_0 : i32, i32
  }
  func.func @transform_10(%arg0: i32, %arg1: i32) -> (i32, i32) {
    %c0_i32 = arith.constant 0 : i32
    %c0_i32_0 = arith.constant 0 : i32
    %c0_i32_1 = arith.constant 0 : i32
    return %c0_i32, %c0_i32_0 : i32, i32
  }
  func.func @transform_11(%arg0: i32, %arg1: i32) -> (i32, i32, i32) {
    %c0_i32 = arith.constant 0 : i32
    %c0_i32_0 = arith.constant 0 : i32
    return %arg0, %arg1, %c0_i32 : i32, i32, i32
  }
}

</mosaic_0001>

<bundles_post_ra>
// kernel: tpu_custom_call.1
= control target key start
LH: loop header
LB: loop body
LE: loop exit
PB: predicated region body
PF: predicated region fallthrough
CT: control target
= control target key end

     0   :  { %s1879_s0 = inlined_call_operand.hbm [shape: f32[2,8,32], index: 0, kind: input, shape index: {}]   ;;  %s1880_s1 = inlined_call_operand.hbm [shape: f32[1,32], index: 1, kind: input, shape index: {}]   ;;  %s1881_s2 = inlined_call_operand.vmem [shape: f32[1,32], index: 2, kind: input, shape index: {}]   ;;  %s1882_s3 = inlined_call_operand.hbm [shape: bf16[32,32], index: 3, kind: input, shape index: {}]   ;;  %s1883_s4 = inlined_call_operand.hbm [shape: bf16[32,32], index: 4, kind: input, shape index: {}]   ;;  %s1884_s5 = inlined_call_operand.hbm [shape: bf16[32,32], index: 5, kind: input, shape index: {}]   ;;  %s1885_s6 = inlined_call_operand.vmem [shape: f32[1,32], index: 6, kind: input, shape index: {}]   ;;  %s1886_s7 = inlined_call_operand.vmem [shape: f32[1,32], index: 7, kind: input, shape index: {}]   ;;  %s1887_s8 = inlined_call_operand.vmem [shape: f32[1,32], index: 8, kind: input, shape index: {}]   ;;  %s1888_s9 = inlined_call_operand.hbm [shape: bf16[32,32], index: 9, kind: input, shape index: {}]   ;;  %s1889_s10 = inlined_call_operand.vmem [shape: f32[1,32], index: 10, kind: input, shape index: {}]   ;;  %s1890_s11 = inlined_call_operand.hbm [shape: f32[2,8,32], index: 11, kind: output, shape index: {}]  }
   0x1   :  { %1903 = sst [smem:[#allocation30_spill]] %s1880_s1 }
   0x2   :  { %1904 = sst [smem:[#allocation31_spill]] %s1882_s3 }
   0x3   :  { %1905 = sst [smem:[#allocation32_spill]] %s1883_s4 }
   0x4   :  { %1906 = sst [smem:[#allocation33_spill]] %s1890_s11 }
   0x5   :  { %16 = vsyncpa [#allocation8], 0 }
   0x6   :  { %17 = vsyncpa [#allocation11], 0 }
   0x7   :  { %18 = vsyncpa [#allocation14], 0 }
   0x8   :  { %19 = vsyncpa [#allocation17], 0 }
   0x9   :  { %20 = vsyncpa [#allocation9], 0 }
   0xa   :  { %22 = vsyncpa [#allocation9 + $0x1], 0  ;;  %s1607_s17 = smov 0   ;;  %s1609_s18 = smov 0  }
   0xb   :  { %s1611_s19 = smov 0   ;;  %s1613_s20 = smov 0  }
   0xc   :  { %s1615_s21 = smov 0   ;;  %s1617_s22 = smov 0  }
   0xd LB: > { %1907 = sst [smem:[#allocation24_spill]] %s1506_s17  ;;  %s1033_s26 = sadd.s32 4294967295, %s1526_s22   ;;  %s1526_s22 = sphi %s1617_s22, %s28_s22   ;;  %s1522_s21 = sphi %s1615_s21, %s1934_s21   ;;  %s1518_s20 = sphi %s1613_s20, %s1933_s20   ;;  %s1514_s19 = sphi %s1611_s19, %s1932_s19   ;;  %s1510_s18 = sphi %s1609_s18, %s1936_s18   ;;  %s1506_s17 = sphi %s1607_s17, %s1935_s17  }
   0xe   : > { %1908 = sst [smem:[#allocation25_spill]] %s1514_s19  ;;  %p1035_p0 = scmp.ge.s32.totalorder %s1526_s22, 1 }
   0xf   : > { %1909 = sst [smem:[#allocation26_spill]] %s1522_s21  ;;  %p1642_p1 = scmp.eq.s32.totalorder %s1033_s26, 0 }
  0x10   : > { %1910 = sst [smem:[#allocation27_spill]] %s1526_s22  ;;  %p309_p2 = scmp.lt.s32.totalorder %s1526_s22, 3 }
  0x11   : > { %s1911_s1 = sld [smem:[#allocation30_spill]]  ;;  %s1532_s29 = smov [#allocation10]  }
  0x12   : > { %p1647_p3 = pnand %p1035_p0, %p309_p2  ;;  %s337_s30 = sshll.u32 %s1532_s29, 4  ;;  %s338_s30 = int_to_ptr.vmem [resolvable:$true] %s337_s30 }
  0x13   : > { %s1914_s4 = sld [smem:[#allocation32_spill]]  ;;  %s1533_s16 = smov [#allocation13]  }
  0x14   : > { %p1127_p4 = pneg %p1647_p3  ;;  %s365_s23 = sshll.u32 %s1533_s16, 4  ;;  %s366_s23 = int_to_ptr.vmem [resolvable:$true] %s365_s23 }
  0x15   : > { %s1891_s24 = smov 64   ;;  %s1893_s29 = smov 4  }
  0x16   : > { %p1661_p5 = pnand %p1127_p4, %p1642_p1  ;;  %s1034_s12 = sadd.s32 4294967294, %s1526_s22  }
  0x17   : > { %s335_s25 = sshll.u32 %s1911_s1, 4  ;;  %s40_s13 = sadd.s32 1, %s1522_s21  ;;  %s336_s25 = int_to_ptr.hbm [resolvable:$true] %s335_s25 }
  0x18   : > { %1133 = dma.hbm_to_vmem [thread:$0]  (!%p1661_p5), %s336_s25, 16, %s338_s30, [#allocation11]  }
  0x19   : > { %s363_s14 = sshll.u32 %s1914_s4, 4  ;;  %s47_s1 = sadd.s32 1, %s1514_s19  ;;  %s364_s14 = int_to_ptr.hbm [resolvable:$true] %s363_s14 }
  0x1a   : > { %1139 = dma.hbm_to_vmem [thread:$0]  (!%p1661_p5), %s364_s14, 256, %s366_s23, [#allocation14], %s1891_s24, %s1891_s24, %s1893_s29  }
  0x1b   : > { %p42_p6 = scmp.ge.s32.totalorder %s40_s13, 2  ;;  %p60_p7 = scmp.ne.s32.totalorder %s1510_s18, %s1506_s17 }
  0x1c   : > { %p295_p8 = scmp.ne.s32.totalorder %s1514_s19, %s1510_s18  ;;  %p296_p9 = scmp.eq.s32.totalorder %s1033_s26, 1 }
  0x1d   : > { %s1938_s13 = smov (%p42_p6, %s40_s13), 0  ;;  %p1683_p10 = por %p1642_p1, %p60_p7 }
  0x1e   : > { %1916 = sst [smem:[#allocation28_spill]] %s1938_s13  ;;  %p1687_p11 = por %p296_p9, %p295_p8 }
  0x1f   : > { %s44_s14 = ssub.s32 %s1522_s21, %s1938_s13  ;;  %p302_p12 = scmp.eq.s32.totalorder %s1034_s12, 1 }
  0x20   : > { %p45_p13 = scmp.eq.s32.totalorder %s44_s14, 0  ;;  %s1900_s16 = sshll.u32 %s1518_s20, 3 }
  0x21   : > { %p1694_p0 = por %p302_p12, %p60_p7  ;;  %s321_s29 = scalar_lea.hbm %s1879_s0, %s1900_s16 }
  0x22   : > { %s1704_s4 = scalar_select %p45_p13, %s1514_s19, %s47_s1  }
  0x23   : > { %s1919_s26 = scalar_select %p1694_p0, 1, 0 }
  0x24   : > { %1920 = sst [smem:[#allocation29_spill]] %s1704_s4  ;;  %s323_s17 = sshll.u32 %s321_s29, 4  ;;  %s324_s17 = int_to_ptr.hbm [resolvable:$true] %s323_s17 }
  0x25   : > { %s1536_s22 = smov [#allocation7]   ;;  %p1711_p2 = pnand %p1127_p4, %p1683_p10 }
  0x26   : > { %s325_s11 = sshll.u32 %s1536_s22, 4  ;;  %s1922_s3 = sld [smem:[#allocation31_spill]]  ;;  %s326_s11 = int_to_ptr.vmem [resolvable:$true] %s325_s11 }
  0x27   : > { %s1308_s1 = sshra.s32 %s324_s17, 4  ;;  %p1312_p7 = pneg %p1711_p2  ;;  %s1309_s1 = int_to_ptr.hbm [resolvable:$true] %s1308_s1 }
  0x28   : > { %s1310_s29 = scalar_lea.hbm %s1309_s1, 8  ;;  %s1315_s16 = scalar_lea.hbm %s1879_s0, 16 }
  0x29   : > { %p1311_p6 = scmp.ne.s32.totalorder %s1309_s1, %s1310_s29  ;;  %p1316_p4 = scmp.lt.s32.totalorder %s1309_s1, %s1879_s0 }
  0x2a   : > { %p1317_p12 = scmp.lt.s32.totalorder %s1315_s16, %s1310_s29 }
  0x2b   : > { %p1313_p8 = pnand %p1312_p7, %p1311_p6 }
  0x2c   : > { %s349_s24 = sshll.u32 %s1922_s3, 4  ;;  %p1318_p13 = por %p1317_p12, %p1316_p4  ;;  %s350_s24 = int_to_ptr.hbm [resolvable:$true] %s349_s24 }
  0x2d   : > { %p1314_p9 = pneg %p1313_p8 }
  0x2f   : > { %p1319_p0 = pnand %p1318_p13, %p1314_p9 }
  0x31   : > { %1322 = shalt.err (!%p1319_p0)
}
  0x32   : > { %1130 = dma.hbm_to_vmem [thread:$0]  (!%p1711_p2), %s324_s17, 128, %s326_s11, [#allocation8]  }
  0x33   : > { %s1537_s13 = smov [#allocation12]   ;;  %s377_s22 = sshll.u32 %s1884_s5, 4  ;;  %s378_s22 = int_to_ptr.hbm [resolvable:$true] %s377_s22 }
  0x34   : > { %s351_s14 = sshll.u32 %s1537_s13, 4  ;;  %s1923_s4 = smov 4   ;;  %s352_s14 = int_to_ptr.vmem [resolvable:$true] %s351_s14 }
  0x35   : > { %s1924_s21 = smov 64   ;;  %s400_s12 = sshll.u32 %s1888_s9, 4  ;;  %s401_s12 = int_to_ptr.hbm [resolvable:$true] %s400_s12 }
  0x36   : > { %1136 = dma.hbm_to_vmem [thread:$0]  (!%p1661_p5), %s350_s24, 256, %s352_s14, [#allocation11], %s1924_s21, %s1924_s21, %s1923_s4  }
  0x37   : > { %s1538_s29 = smov [#allocation15]   ;;  %s1539_s3 = smov [#allocation16]  }
  0x38   : > { %s379_s11 = sshll.u32 %s1538_s29, 4  ;;  %s402_s17 = sshll.u32 %s1539_s3, 4  ;;  %s380_s11 = int_to_ptr.vmem [resolvable:$true] %s379_s11  ;;  %s403_s17 = int_to_ptr.vmem [resolvable:$true] %s402_s17 }
  0x39   : > { %1142 = dma.hbm_to_vmem [thread:$0]  (!%p1661_p5), %s378_s22, 256, %s380_s11, [#allocation14], %s1924_s21, %s1924_s21, %s1923_s4  }
  0x3a   : > { %1145 = dma.hbm_to_vmem [thread:$0]  (!%p1661_p5), %s401_s12, 256, %s403_s17, [#allocation17], %s1924_s21, %s1924_s21, %s1923_s4  }
  0x3b   : > { %421 = sbr.rel (%p1647_p3) target bundleno = 1408 (0x580), region = 64 }
  0x40   : > { %1485 = dma.done.wait (%p1683_p10), [#allocation8], 128  }
  0x41   : > { %1487 = vsyncadd (%p1683_p10), [#allocation8], 4294967168 }
  0x42   : > { %1489 = dma.done.wait (%p1642_p1), [#allocation11], 272  }
  0x43   : > { %1491 = vsyncadd (%p1642_p1), [#allocation11], 4294967024 }
  0x44   : > { %1493 = dma.done.wait (%p1642_p1), [#allocation14], 512  }
  0x45   : > { %1495 = vsyncadd (%p1642_p1), [#allocation14], 4294966784 }
  0x46   : > { %1497 = dma.done.wait (%p1642_p1), [#allocation17], 256  }
  0x47   : > { %1499 = vsyncadd (%p1642_p1), [#allocation17], 4294967040  ;;  %vm500_vm0 = vcmask 261120   ;;  %v1767_v0 = vld [vmem:[#allocation7] sm:$0xff]  ;;  %v1540_v2 = vmov 32.0   ;;  %s479_s19 = sand.u32 1, %s1510_s18  }
  0x48   : > { %v648_v1 = vsel %vm500_vm0, %v1767_v0, 0.0  ;;  %1237 = vrcp.f32 %v1540_v2  ;;  %s1778_s27 = sshll.u32 %s479_s19, 3  ;;  %v1100_v19 = vld [vmem:[#allocation12 + $0x8] sm:$0xff]  ;;  %v1099_v20 = vld [vmem:[#allocation12] sm:$0xff]  ;;  %v1096_v21 = vld [vmem:[#allocation13 + $0x8] sm:$0xff]  ;;  %vm600_vm8 = vcmask 60416  }
  0x49   : > { %649 = vadd.xlane.f32.xlu0 %v648_v1  ;;  %715 = vmatpush.bf16.msra.mxu2 %v1100_v19  ;;  %v1098_v22 = vld [vmem:[#allocation15 + $0x8] sm:$0xff]  ;;  %v1095_v24 = vld [vmem:[#allocation13] sm:$0xff]  ;;  %v1097_v25 = vld [vmem:[#allocation15] sm:$0xff]  ;;  %s1541_s4 = smov 112   ;;  %s1542_s21 = smov 120  }
  0x4a   : > { %563 = vmatpush.bf16.msra.mxu0 %v1096_v21  ;;  %592 = vmatpush.bf16.msra.mxu1 %v1098_v22  ;;  %v1232_v39 = vld [vmem:[#allocation10] ss:$0 sm:$0xff]  ;;  %v1233_v42 = vld [vmem:[%s1881_s2] ss:$0 sm:$0xff]  ;;  %s1543_s16 = smov 104   ;;  %s481_s1 = scalar_lea.vmem [#allocation18], %s1778_s27 }
  0x4b   : > { %v1234_v55 = vld [vmem:[%s1885_s6] ss:$0 sm:$0xff]  ;;  %s1808_s12 = smov 0  }
  0x4c   : > { %v1235_v56 = vld [vmem:[%s1886_s7] ss:$0 sm:$0xff] }
  0x4d   : > { %716 = vmatpush.bf16.msra.mxu2 %v1099_v20  ;;  %v1236_v57 = vld [vmem:[%s1887_s8] ss:$0 sm:$0xff] }
  0x4e   : > { %v1238_v3 = vpop.eup %1237  ;;  %564 = vmatpush.bf16.msra.mxu0 %v1095_v24  ;;  %593 = vmatpush.bf16.msra.mxu1 %v1097_v25 }
  0x4f   : > { %v505_v4 = vmul.f32 32.0, %v1238_v3  ;;  %vm509_vm1 = vweird.f32 %v1238_v3 }
  0x51   : > { %502 = vadd.xlane.f32.xlu0 %v648_v1  ;;  %v506_v5 = vsub.f32 1.0, %v505_v4 }
  0x53   : > { %v507_v6 = vmul.f32 %v1238_v3, %v506_v5 }
  0x55   : > { %v508_v7 = vadd.f32 %v1238_v3, %v507_v6 }
  0x57   : > { %v510_v8 = vsel %vm509_vm1, %v1238_v3, %v508_v7 }
  0xbc   : > { %v650_v9 = vpop.xlane.xlu0 %649 }
  0xbd   : > { %v658_v10 = vmul.f32 %v650_v9, %v510_v8 }
  0xbf   : > { %v659_v11 = vsub.f32 %v1767_v0, %v658_v10 }
  0xc1   : > { %v660_v12 = vmul.f32 %v659_v11, %v659_v11 }
  0xc3   : > { %v661_v13 = vsel %vm500_vm0, %v660_v12, 0.0 }
  0xc4   : > { %662 = vadd.xlane.f32.xlu1 %v661_v13  ;;  %v503_v14 = vpop.xlane.xlu0 %502 }
  0xc5   : > { %v511_v15 = vmul.f32 %v510_v8, %v503_v14 }
  0xc7   : > { %v512_v16 = vsub.f32 %v1767_v0, %v511_v15 }
  0xc9   : > { %v513_v17 = vmul.f32 %v512_v16, %v512_v16 }
  0xcb   : > { %v514_v18 = vsel %vm500_vm0, %v513_v17, 0.0 }
  0xcc   : > { %515 = vadd.xlane.f32.xlu1 %v514_v18 }
 0x137   : > { %v663_v23 = vpop.xlane.xlu1 %662 }
 0x138   : > { %v664_v26 = vmul.f32 %v663_v23, %v510_v8 }
 0x13a   : > { %v665_v27 = vadd.f32 1e-05, %v664_v26 }
 0x13c   : > { %1239 = vrsqrt.f32 %v665_v27  ;;  %vm672_vm3 = vweird.f32 %v665_v27 }
 0x13f   : > { %v516_v28 = vpop.xlane.xlu1 %515 }
 0x140   : > { %v517_v29 = vmul.f32 %v516_v28, %v510_v8 }
 0x142   : > { %v1240_v30 = vpop.eup %1239  ;;  %v518_v31 = vadd.f32 1e-05, %v517_v29 }
 0x143   : > { %v667_v32 = vmul.f32 %v1240_v30, %v665_v27  ;;  %vm673_vm2 = vweird.f32 %v1240_v30 }
 0x144   : > { %1241 = vrsqrt.f32 %v518_v31  ;;  %vm674_vm4 = vmor %vm672_vm3, %vm673_vm2  ;;  %vm525_vm6 = vweird.f32 %v518_v31 }
 0x145   : > { %v668_v33 = vmul.f32 %v1240_v30, %v667_v32 }
 0x147   : > { %v669_v34 = vmul.f32 0.5, %v668_v33 }
 0x149   : > { %v670_v35 = vsub.f32 1.5, %v669_v34 }
 0x14a   : > { %v1242_v36 = vpop.eup %1241 }
 0x14b   : > { %v671_v37 = vmul.f32 %v1240_v30, %v670_v35  ;;  %v520_v38 = vmul.f32 %v1242_v36, %v518_v31  ;;  %vm526_vm5 = vweird.f32 %v1242_v36 }
 0x14c   : > { %vm527_vm7 = vmor %vm525_vm6, %vm526_vm5 }
 0x14d   : > { %v675_v40 = vsel %vm674_vm4, %v1240_v30, %v671_v37  ;;  %v521_v41 = vmul.f32 %v1242_v36, %v520_v38 }
 0x14e   : > { %v676_v43 = vmul.f32 %v675_v40, %v659_v11 }
 0x14f   : > { %v522_v44 = vmul.f32 0.5, %v521_v41 }
 0x150   : > { %v680_v45 = vmul.f32 %v1232_v39, %v676_v43 }
 0x151   : > { %v523_v46 = vsub.f32 1.5, %v522_v44 }
 0x152   : > { %v684_v47 = vadd.f32 %v1233_v42, %v680_v45 }
 0x153   : > { %v524_v48 = vmul.f32 %v1242_v36, %v523_v46 }
 0x154   : > { %v685_v49 = vpack.c.bf16 %v684_v47, %v684_v47 }
 0x155   : > { %v528_v50 = vsel %vm527_vm7, %v1242_v36, %v524_v48 }
 0x156   : > { %1075 = vmatmul.msk.bf16.vlgmr.msra.gmra.mxu2 %vm500_vm0, %v685_v49  ;;  %v529_v51 = vmul.f32 %v528_v50, %v512_v16 }
 0x158   : > { %v533_v52 = vmul.f32 %v1232_v39, %v529_v51 }
 0x15a   : > { %v537_v53 = vadd.f32 %v1233_v42, %v533_v52 }
 0x15c   : > { %v538_v54 = vpack.c.bf16 %v537_v53, %v537_v53 }
 0x15e   : > { %1057 = vmatmul.msk.bf16.vlgmr.msra.gmra.mxu0 %vm500_vm0, %v538_v54  ;;  %1066 = vmatmul.msk.bf16.vlgmr.msra.gmra.mxu1 %vm500_vm0, %v538_v54 }
 0x1d9   : > { %v718_v58 = vpop.f32.mrf.mxu2 }
 0x1da   : > { %v719_v59 = vadd.f32 %v1234_v55, %v718_v58 }
 0x1db   : > { %v566_v60 = vpop.f32.mrf.mxu0  ;;  %v595_v61 = vpop.f32.mrf.mxu1 }
 0x1dc   : > { %v722_v62 = vpack.c.bf16 %v719_v59, %v719_v59  ;;  %v567_v63 = vadd.f32 %v1235_v56, %v566_v60  ;;  %v596_v1 = vadd.f32 %v1236_v57, %v595_v61 }
 0x1de   : > { %724 = vst.msk [vmem:[#allocation4] sm:$0xf] %vm600_vm8, %v722_v62  ;;  %v570_v2 = vpack.c.bf16 %v567_v63, %v567_v63  ;;  %v599_v3 = vpack.c.bf16 %v596_v1, %v596_v1 }
 0x1e0   : > { %601 = vst.msk [vmem:[#allocation2] sm:$0xf] %vm600_vm8, %v570_v2  ;;  %625 = vrot.lane.b32.xlu1 %v599_v3, %s1541_s4  ;;  %618 = vrot.lane.b32.xlu0 %v570_v2, %s1541_s4 }
 0x1e1   : > { %602 = vst.msk [vmem:[#allocation3] sm:$0xf] %vm600_vm8, %v599_v3  ;;  %604 = vrot.lane.b32.xlu2 %v570_v2, %s1542_s21  ;;  %v720_v4 = vpop.f32.mrf.mxu2 }
 0x1e3   : > { %v568_v5 = vpop.f32.mrf.mxu0  ;;  %v597_v6 = vpop.f32.mrf.mxu1 }
 0x1e8   : > { %731 = vrot.lane.b32.xlu0 %v722_v62, %s1541_s4 }
 0x1e9   : > { %612 = vrot.lane.b32.xlu2 %v599_v3, %s1542_s21 }
 0x1f1   : > { %631 = vrot.lane.b32.xlu2 %v570_v2, %s1543_s16 }
 0x1f9   : > { %638 = vrot.lane.b32.xlu2 %v599_v3, %s1543_s16 }
 0x201   : > { %726 = vrot.lane.b32.xlu2 %v722_v62, %s1542_s21 }
 0x209   : > { %736 = vrot.lane.b32.xlu2 %v722_v62, %s1543_s16 }
 0x23b   : > { %v605_v7 = vpop.permute.xlu2 %604 }
 0x23c   : > { %610 = vst.msk [vmem:[#allocation2 + $0x4] sm:$0xf] %vm600_vm8, %v605_v7 }
 0x243   : > { %v613_v8 = vpop.permute.xlu2 %612 }
 0x244   : > { %617 = vst.msk [vmem:[#allocation3 + $0x4] sm:$0xf] %vm600_vm8, %v613_v8 }
 0x24b   : > { %v632_v9 = vpop.permute.xlu2 %631 }
 0x24c   : > { %637 = vst.msk [vmem:[#allocation2 + $0xc] sm:$0xf] %vm600_vm8, %v632_v9 }
 0x252   : > { %v626_v10 = vpop.permute.xlu1 %625  ;;  %v619_v11 = vpop.permute.xlu0 %618 }
 0x253   : > { %630 = vst.msk [vmem:[#allocation3 + $0x8] sm:$0xf] %vm600_vm8, %v626_v10  ;;  %v639_v12 = vpop.permute.xlu2 %638 }
 0x254   : > { %624 = vst.msk [vmem:[#allocation2 + $0x8] sm:$0xf] %vm600_vm8, %v619_v11 }
 0x255   : > { %643 = vst.msk [vmem:[#allocation3 + $0xc] sm:$0xf] %vm600_vm8, %v639_v12 }
 0x25a   : > { %v732_v13 = vpop.permute.xlu0 %731 }
 0x25b   : > { %735 = vst.msk [vmem:[#allocation4 + $0x8] sm:$0xf] %vm600_vm8, %v732_v13  ;;  %v727_v14 = vpop.permute.xlu2 %726 }
 0x25c   : > { %730 = vst.msk [vmem:[#allocation4 + $0x4] sm:$0xf] %vm600_vm8, %v727_v14 }
 0x263   : > { %v737_v15 = vpop.permute.xlu2 %736 }
 0x264   : > { %740 = vst.msk [vmem:[#allocation4 + $0xc] sm:$0xf] %vm600_vm8, %v737_v15 }
 0x265 LB: >> { %s1814_s29 = sshll.u32 %s1530_s12, 2  ;;  %vm756_vm9 = vcmask 64512   ;;  %vm791_vm10 = vcmask 1043456   ;;  %s746_s12 = sadd.s32 1, %s1530_s12   ;;  %s1530_s12 = sphi %s1808_s12, %s746_s12  }
 0x266   : >> { %s751_s11 = scalar_lea.vmem [#allocation2], %s1814_s29  ;;  %s748_s3 = scalar_lea.vmem [#allocation4], %s1814_s29 }
 0x267   : >> { %v752_v16 = vld [vmem:[%s751_s11] sm:$0xf]  ;;  %s754_s17 = scalar_lea.vmem [#allocation3], %s1814_s29  ;;  %s810_s28 = scalar_lea.vmem [#allocation5], %s1814_s29 }
 0x268   : >> { %v761_v17 = vsel %vm756_vm9, %v752_v16, 0  ;;  %v755_v27 = vld [vmem:[%s754_s17] sm:$0xf]  ;;  %p743_p1 = scmp.ge.s32.totalorder %s746_s12, 4  }
 0x269   : >> { %770 = vmatpush.bf16.xpose.msra.mxu0 %v761_v17  ;;  %v793_v28 = vsel %vm791_vm10, %v755_v27, 0  ;;  %s1544_s15 = smov (%p743_p1), 8   ;;  %s1545_s25 = smov (%p743_p1), 24   ;;  %v1102_v40 = vld [vmem:[#allocation16 + $0x8] sm:$0xff] (%p743_p1)  ;;  %v1101_v41 = vld [vmem:[#allocation16] sm:$0xff] (%p743_p1)  ;;  %vm820_vm11 = vcmask (%p743_p1), 126016  }
 0x26a   : >> { %802 = vmatpush.bf16.msra.mxu1 %v793_v28  ;;  %s1546_s24 = smov (%p743_p1), 16   ;;  %vm828_vm12 = vcmask (%p743_p1), 191616   ;;  %vm836_vm13 = vcmask (%p743_p1), 257216   ;;  %v1247_v46 = vld [vmem:[%s1889_s10] ss:$0 sm:$0xff] (%p743_p1)  ;;  %s1925_s14 = sshll.u32 (%p743_p1), %s1518_s20, 3 }
 0x26b   : >> { %v749_v18 = vld [vmem:[%s748_s3] sm:$0xf]  ;;  %s1926_s21 = sld [smem:[#allocation33_spill]] (%p743_p1)  ;;  %s891_s29 = sshll.u32 (%p743_p1), %s481_s1, 4  ;;  %s892_s29 = int_to_ptr.vmem [resolvable:$true] %s891_s29 }
 0x26c   : > { %s878_s3 = scalar_lea.sflag (%p743_p1), [#allocation9], %s479_s19 }
 0x270   : >> { %1079 = vmatmul.msk.bf16.vlgmr.msra.gmra.mxu0 %vm756_vm9, %v749_v18 }
 0x271   : > { %868 = vmatpush.bf16.msra.mxu0 (%p743_p1), %v1102_v40  ;;  %s1927_s16 = smov (%p743_p1), %s1926_s21  ;;  %s889_s12 = scalar_lea.hbm (%p743_p1), %s1926_s21, %s1925_s14 }
 0x272   : > { %s893_s11 = sshll.u32 (%p743_p1), %s889_s12, 4  ;;  %s894_s11 = int_to_ptr.hbm [resolvable:$true] %s893_s11 }
 0x273   : > { %s1442_s17 = sshra.s32 (%p743_p1), %s894_s11, 4  ;;  %s1443_s17 = int_to_ptr.hbm [resolvable:$true] %s1442_s17 }
 0x274   : > { %s1444_s20 = scalar_lea.hbm (%p743_p1), %s1443_s17, 8  ;;  %p1449_p0 = scmp.lt.s32.totalorder (%p743_p1), %s1443_s17, %s1927_s16 }
 0x275   : > { %869 = vmatpush.bf16.msra.mxu0 (%p743_p1), %v1101_v41  ;;  %p1445_p3 = scmp.ne.s32.totalorder (%p743_p1), %s1443_s17, %s1444_s20 }
 0x277   : > { %p1446_p5 = pnand (%p743_p1), %p1445_p3, %p1687_p11 }
 0x279   : > { %p1447_p10 = pneg (%p743_p1), %p1446_p5 }
 0x2ed   : >> { %v772_v19 = vpop.f32.mrf.mxu0 }
 0x2ee   : >> { %v776_v20 = vsel %vm756_vm9, %v772_v19, -inf }
 0x2ef   : >> { %777 = vmax.xlane.f32.xlu0 %v776_v20 }
 0x2f5   : >> { %v774_v21 = vpop.f32.mrf.mxu0 }
 0x362   : >> { %v778_v22 = vpop.xlane.xlu0 %777 }
 0x363   : >> { %v779_v23 = vsub.f32 %v772_v19, %v778_v22 }
 0x365   : >> { %v780_v24 = vmul.f32 1.442695, %v779_v23 }
 0x367   : >> { %1243 = vpow2.f32 %v780_v24 }
 0x36d   : >> { %v1244_v25 = vpop.eup %1243 }
 0x36e   : >> { %v782_v26 = vsel %vm756_vm9, %v1244_v25, 0.0 }
 0x36f   : >> { %783 = vadd.xlane.f32.xlu0 %v782_v26 }
 0x3e2   : >> { %v784_v29 = vpop.xlane.xlu0 %783 }
 0x3e3   : >> { %1245 = vrcp.f32 %v784_v29 }
 0x3e9   : >> { %v1246_v30 = vpop.eup %1245 }
 0x3ea   : >> { %v786_v31 = vmul.f32 %v1246_v30, %v1244_v25 }
 0x3ec   : >> { %v787_v32 = vpack.c.bf16 %v786_v31, %v786_v31 }
 0x3ee   : >> { %1080 = vmatmul.msk.bf16.vlgmr.msra.gmra.mxu1 %vm756_vm9, %v787_v32 }
 0x46b   : >> { %v804_v33 = vpop.f32.mrf.mxu1 }
 0x46c   : >> { %v808_v34 = vpack.c.bf16 %v804_v33, %v804_v33 }
 0x46e   : >> { %811 = vst.msk [vmem:[%s810_s28] sm:$0xf] %vm600_vm8, %v808_v34 }
 0x46f   : > { %745 = sbr.rel (!%p743_p1) target bundleno = 613 (0x265), region = 150 }
 0x473   : >> { %v806_v35 = vpop.f32.mrf.mxu1 }
 0x475   : > { %v815_v36 = vld [vmem:[#allocation5 + $0x4] sm:$0xf]  ;;  %v831_v37 = vld [vmem:[#allocation5 + $0xc] sm:$0xf]  ;;  %v823_v38 = vld [vmem:[#allocation5 + $0x8] sm:$0xf] }
 0x476   : > { %817 = vrot.lane.b32.xlu0 %v815_v36, %s1544_s15  ;;  %833 = vrot.lane.b32.xlu1 %v831_v37, %s1545_s25  ;;  %v812_v39 = vld [vmem:[#allocation5] sm:$0xf]  ;;  %s1448_s25 = scalar_lea.hbm %s1927_s16, 16 }
 0x477   : > { %813 = vst.msk [vmem:[#allocation6] sm:$0xf] %vm600_vm8, %v812_v39  ;;  %p1450_p2 = scmp.lt.s32.totalorder %s1448_s25, %s1444_s20 }
 0x479   : > { %p1451_p6 = por %p1450_p2, %p1449_p0 }
 0x47b   : > { %p1452_p7 = pnand %p1451_p6, %p1447_p10 }
 0x47e   : > { %825 = vrot.lane.b32.xlu0 %v823_v38, %s1546_s24 }
 0x4e8   : > { %v818_v42 = vpop.permute.xlu0 %817  ;;  %v834_v43 = vpop.permute.xlu1 %833 }
 0x4e9   : > { %821 = vst.msk [vmem:[#allocation6] sm:$0xf] %vm820_vm11, %v818_v42 }
 0x4f0   : > { %v826_v44 = vpop.permute.xlu0 %825 }
 0x4f1   : > { %829 = vst.msk [vmem:[#allocation6] sm:$0xf] %vm828_vm12, %v826_v44 }
 0x4f2   : > { %837 = vst.msk [vmem:[#allocation6] sm:$0xf] %vm836_vm13, %v834_v43 }
 0x4f9   : > { %v838_v45 = vld [vmem:[#allocation6] sm:$0xf] }
 0x4fa   : > { %1090 = vmatmul.msk.bf16.vlgmr.msra.gmra.mxu0 %vm500_vm0, %v838_v45 }
 0x577   : > { %v871_v47 = vpop.f32.mrf.mxu0 }
 0x578   : > { %v872_v48 = vadd.f32 %v1247_v46, %v871_v47 }
 0x57a   : > { %v875_v49 = vadd.f32 %v872_v48, %v1767_v0 }
 0x57c   : > { %876 = vst.msk [vmem:[%s481_s1] sm:$0xff] %vm500_vm0, %v875_v49 }
 0x57d   : > { %1455 = shalt.err (!%p1452_p7)
}
 0x57e   : > { %1125 = dma.vmem_to_hbm [thread:$0]  (%p1687_p11), %s892_s29, 128, %s894_s11, %s878_s3  }
 0x57f   : > { %v873_v0 = vpop.f32.mrf.mxu0 }
 0x580 PF: > { %s1928_s19 = sld [smem:[#allocation27_spill]]  ;;  %p1930_p9 = scmp.ne.s32.totalorder %s1919_s26, 0 }
 0x581   : > { %s1929_s27 = sld [smem:[#allocation24_spill]] }
 0x586   : > { %p1160_p8 = scmp.ge.s32.totalorder %s1928_s19, 2 }
 0x587   : > { %s905_s1 = sand.u32 1, %s1929_s27  }
 0x588   : > { %p1147_p4 = pnand %p1160_p8, %p1930_p9  ;;  %s906_s13 = scalar_lea.sflag [#allocation9], %s905_s1 }
 0x58a   : > { %p1148_p12 = pneg %p1147_p4 }
 0x58c   : > { %1501 = dma.done.wait (%p1148_p12), %s906_s13, 128  }
 0x58d   : > { %1503 = vsyncadd (%p1148_p12), %s906_s13, 4294967168  ;;  %s28_s22 = sadd.s32 1, %s1928_s19   ;;  %s1931_s14 = sld [smem:[#allocation25_spill]] }
 0x58e   : > { %p25_p13 = scmp.ge.s32.totalorder %s28_s22, 4   ;;  %s1932_s19 = sld [smem:[#allocation29_spill]] }
 0x58f   : > { %s1933_s20 = sld [smem:[#allocation26_spill]]  ;;  %s1935_s17 = smov %s1510_s18 }
 0x590   : > { %s1934_s21 = sld [smem:[#allocation28_spill]]  ;;  %27 = sbr.rel (!%p25_p13) target bundleno = 13 (0xd), region = 161 }
 0x593   : > { %s1936_s18 = smov %s1931_s14 }
 0x595   :  { %912 = vsyncpa [#allocation8], 1 }
 0x596   :  { %914 = vsyncpa [#allocation8 + $0x1], 1 }
 0x597   :  { %915 = vsyncpa [#allocation11], 1 }
 0x598   :  { %916 = vsyncpa [#allocation14], 1 }
 0x599   :  { %917 = vsyncpa [#allocation17], 1 }
 0x59a   :  { %918 = vsyncpa [#allocation9], 1 }
 0x59b   :  { %920 = vsyncpa [#allocation9 + $0x1], 1 }

// kernel: tpu_custom_call.1
= control target key start
LH: loop header
LB: loop body
LE: loop exit
PB: predicated region body
PF: predicated region fallthrough
CT: control target
= control target key end

     0   :  { %s1888_s0 = inlined_call_operand.hbm [shape: f32[2,8,32], index: 0, kind: input, shape index: {}]   ;;  %s1889_s1 = inlined_call_operand.hbm [shape: f32[1,32], index: 1, kind: input, shape index: {}]   ;;  %s1890_s2 = inlined_call_operand.vmem [shape: f32[1,32], index: 2, kind: input, shape index: {}]   ;;  %s1891_s3 = inlined_call_operand.hbm [shape: bf16[32,32], index: 3, kind: input, shape index: {}]   ;;  %s1892_s4 = inlined_call_operand.hbm [shape: bf16[32,32], index: 4, kind: input, shape index: {}]   ;;  %s1893_s5 = inlined_call_operand.hbm [shape: bf16[32,32], index: 5, kind: input, shape index: {}]   ;;  %s1894_s6 = inlined_call_operand.vmem [shape: f32[1,32], index: 6, kind: input, shape index: {}]   ;;  %s1895_s7 = inlined_call_operand.vmem [shape: f32[1,32], index: 7, kind: input, shape index: {}]   ;;  %s1896_s8 = inlined_call_operand.vmem [shape: f32[1,32], index: 8, kind: input, shape index: {}]   ;;  %s1897_s9 = inlined_call_operand.hbm [shape: bf16[32,32], index: 9, kind: input, shape index: {}]   ;;  %s1898_s10 = inlined_call_operand.vmem [shape: f32[1,32], index: 10, kind: input, shape index: {}]   ;;  %s1899_s11 = inlined_call_operand.hbm [shape: f32[2,8,32], index: 11, kind: output, shape index: {}]  }
   0x1   :  { %1902 = sst [smem:[#allocation24_spill]] %s1889_s1 }
   0x2   :  { %1903 = sst [smem:[#allocation25_spill]] %s1891_s3 }
   0x3   :  { %1904 = sst [smem:[#allocation26_spill]] %s1892_s4 }
   0x4   :  { %1905 = sst [smem:[#allocation27_spill]] %s1893_s5 }
   0x5   :  { %1906 = sst [smem:[#allocation28_spill]] %s1897_s9 }
   0x6   :  { %1907 = sst [smem:[#allocation29_spill]] %s1899_s11 }
   0x7   :  { %16 = vsyncpa [#allocation8], 0 }
   0x8   :  { %18 = vsyncpa [#allocation8 + $0x1], 0 }
   0x9   :  { %19 = vsyncpa [#allocation11], 0 }
   0xa   :  { %20 = vsyncpa [#allocation14], 0 }
   0xb   :  { %21 = vsyncpa [#allocation17], 0 }
   0xc   :  { %22 = vsyncpa [#allocation9], 0 }
   0xd   :  { %24 = vsyncpa [#allocation9 + $0x1], 0  ;;  %s1636_s17 = smov 0   ;;  %s1638_s18 = smov 0  }
   0xe   :  { %s1640_s19 = smov 0   ;;  %s1642_s20 = smov 0  }
   0xf   :  { %s1644_s21 = smov 0   ;;  %s1646_s22 = smov 0  }
  0x10 LB: > { %s1900_s23 = sadd.s32 4294967295, %s1556_s22   ;;  %p1061_p0 = scmp.ge.s32.totalorder %s1556_s22, 1  ;;  %s1556_s22 = sphi %s1646_s22, %s30_s22   ;;  %s1552_s21 = sphi %s1644_s21, %s1926_s21   ;;  %s1548_s20 = sphi %s1642_s20, %s1925_s20   ;;  %s1544_s19 = sphi %s1640_s19, %s1924_s19   ;;  %s1540_s18 = sphi %s1638_s18, %s1923_s18   ;;  %s1536_s17 = sphi %s1636_s17, %s1922_s17  }
  0x11   : > { %p1670_p1 = scmp.eq.s32.totalorder %s1900_s23, 0  ;;  %p311_p2 = scmp.lt.s32.totalorder %s1556_s22, 3 }
  0x12   : > { %s1909_s1 = sld [smem:[#allocation24_spill]]  ;;  %p1067_p4 = scmp.ge.s32.totalorder %s1556_s22, 2 }
  0x13   : > { %p1678_p3 = pnand %p1061_p0, %p311_p2  ;;  %s1562_s29 = smov [#allocation10]  }
  0x14   : > { %s325_s30 = sshll.u32 %s1562_s29, 4  ;;  %s1912_s4 = sld [smem:[#allocation26_spill]]  ;;  %s326_s30 = int_to_ptr.vmem [resolvable:$true] %s325_s30 }
  0x15   : > { %p1156_p5 = pneg %p1678_p3  ;;  %s1563_s16 = smov [#allocation13]  }
  0x16   : > { %s353_s25 = sshll.u32 %s1563_s16, 4  ;;  %s1913_s3 = sld [smem:[#allocation25_spill]]  ;;  %s354_s25 = int_to_ptr.vmem [resolvable:$true] %s353_s25 }
  0x17   : > { %p1687_p6 = pnand %p1156_p5, %p1670_p1  ;;  %s1565_s11 = smov 4  }
  0x18   : > { %s323_s27 = sshll.u32 %s1909_s1, 4  ;;  %s1564_s1 = smov 64   ;;  %s324_s27 = int_to_ptr.hbm [resolvable:$true] %s323_s27 }
  0x19   : > { %1159 = dma.hbm_to_vmem [thread:$0]  (!%p1687_p6), %s324_s27, 16, %s326_s30, [#allocation11]  }
  0x1a   : > { %s351_s15 = sshll.u32 %s1912_s4, 4  ;;  %s1914_s5 = sld [smem:[#allocation27_spill]]  ;;  %s352_s15 = int_to_ptr.hbm [resolvable:$true] %s351_s15 }
  0x1b   : > { %1165 = dma.hbm_to_vmem [thread:$0]  (!%p1687_p6), %s352_s15, 256, %s354_s25, [#allocation14], %s1564_s1, %s1564_s1, %s1565_s11  }
  0x1c   : > { %s337_s23 = sshll.u32 %s1913_s3, 4  ;;  %s1566_s27 = smov [#allocation12]   ;;  %s338_s23 = int_to_ptr.hbm [resolvable:$true] %s337_s23 }
  0x1d   : > { %s339_s30 = sshll.u32 %s1566_s27, 4  ;;  %s1567_s16 = smov [#allocation15]   ;;  %s340_s30 = int_to_ptr.vmem [resolvable:$true] %s339_s30 }
  0x1e   : > { %1162 = dma.hbm_to_vmem [thread:$0]  (!%p1687_p6), %s338_s23, 256, %s340_s30, [#allocation11], %s1564_s1, %s1564_s1, %s1565_s11  }
  0x1f   : > { %s367_s15 = sshll.u32 %s1567_s16, 4  ;;  %s1915_s9 = sld [smem:[#allocation28_spill]]  ;;  %s368_s15 = int_to_ptr.vmem [resolvable:$true] %s367_s15 }
  0x20   : > { %s365_s4 = sshll.u32 %s1914_s5, 4  ;;  %s1568_s13 = smov [#allocation16]   ;;  %s366_s4 = int_to_ptr.hbm [resolvable:$true] %s365_s4 }
  0x21   : > { %1168 = dma.hbm_to_vmem [thread:$0]  (!%p1687_p6), %s366_s4, 256, %s368_s15, [#allocation14], %s1564_s1, %s1564_s1, %s1565_s11  }
  0x22   : > { %s390_s14 = sshll.u32 %s1568_s13, 4  ;;  %s1060_s23 = sadd.s32 4294967294, %s1556_s22   ;;  %s391_s14 = int_to_ptr.vmem [resolvable:$true] %s390_s14 }
  0x23   : > { %s42_s27 = sadd.s32 1, %s1552_s21  ;;  %s49_s30 = sadd.s32 1, %s1544_s19 }
  0x24   : > { %p44_p7 = scmp.ge.s32.totalorder %s42_s27, 2  ;;  %p56_p8 = scmp.ne.s32.totalorder %s1544_s19, %s1540_s18 }
  0x25   : > { %s388_s29 = sshll.u32 %s1915_s9, 4  ;;  %p57_p9 = scmp.eq.s32.totalorder %s1556_s22, 0  ;;  %s389_s29 = int_to_ptr.hbm [resolvable:$true] %s388_s29 }
  0x26   : > { %1171 = dma.hbm_to_vmem [thread:$0]  (!%p1687_p6), %s389_s29, 256, %s391_s14, [#allocation17], %s1564_s1, %s1564_s1, %s1565_s11  }
  0x27   : > { %p62_p10 = scmp.ne.s32.totalorder %s1540_s18, %s1536_s17  ;;  %s1928_s27 = smov (%p44_p7, %s42_s27), 0 }
  0x28   : > { %p1723_p11 = por %p57_p9, %p56_p8  ;;  %s46_s11 = ssub.s32 %s1552_s21, %s1928_s27 }
  0x29   : > { %p1729_p12 = por %p1670_p1, %p62_p10  ;;  %s1918_s12 = sadd.s32 4294967295, %s1556_s22  }
  0x2a   : > { %p298_p13 = scmp.eq.s32.totalorder %s1918_s12, 1  ;;  %p47_p0 = scmp.eq.s32.totalorder %s46_s11, 0 }
  0x2b   : > { %p304_p2 = scmp.eq.s32.totalorder %s1060_s23, 1  ;;  %p1185_p6 = scmp.lt.s32.totalorder %s1556_s22, 2 }
  0x2c   : > { %p1737_p5 = por %p298_p13, %p56_p8  ;;  %s407_s26 = sand.u32 1, %s1544_s19  }
  0x2d   : > { %s1743_s15 = scalar_select %p47_p0, %s1544_s19, %s49_s30  }
  0x2e   : > { %p1745_p7 = por %p304_p2, %p62_p10  ;;  %s1068_s29 = sshll.u32 %s407_s26, 3 }
  0x2f   : > { %s1069_s13 = sshll.u32 %s1552_s21, 3  ;;  %s411_s11 = scalar_lea.vmem [#allocation7], %s1068_s29 }
  0x30   : > { %s415_s12 = scalar_lea.hbm %s1888_s0, %s1069_s13  ;;  %s419_s23 = sshll.u32 %s411_s11, 4  ;;  %s420_s23 = int_to_ptr.vmem [resolvable:$true] %s419_s23 }
  0x31   : > { %s417_s5 = sshll.u32 %s415_s12, 4  ;;  %p1173_p8 = pnand %p1185_p6, %p1723_p11  ;;  %s418_s5 = int_to_ptr.hbm [resolvable:$true] %s417_s5 }
  0x32   : > { %s408_s30 = scalar_lea.sflag [#allocation8], %s407_s26  ;;  %428 = sbr.rel (%p1678_p3) target bundleno = 1399 (0x577), region = 64 }
  0x33   : > { %1175 = dma.hbm_to_vmem [thread:$0]  (!%p1173_p8), %s418_s5, 128, %s420_s23, %s408_s30  }
  0x34   : > { %s1759_s9 = sand.u32 (!%p1678_p3), 1, %s1540_s18  }
  0x35   : > { %s1071_s3 = sshll.u32 (!%p1678_p3), %s1759_s9, 3  ;;  %s431_s29 = scalar_lea.sflag (!%p1678_p3), [#allocation8], %s1759_s9 }
  0x36   : > { %s434_s13 = scalar_lea.vmem (!%p1678_p3), [#allocation7], %s1071_s3 }
  0x37   : > { %1515 = dma.done.wait (%p1729_p12), %s431_s29, 128  }
  0x38   : > { %1517 = vsyncadd (%p1729_p12), %s431_s29, 4294967168 }
  0x39   : > { %1519 = dma.done.wait (%p1670_p1), [#allocation11], 272  }
  0x3a   : > { %1521 = vsyncadd (%p1670_p1), [#allocation11], 4294967024 }
  0x3b   : > { %1523 = dma.done.wait (%p1670_p1), [#allocation14], 512  }
  0x3c   : > { %1525 = vsyncadd (%p1670_p1), [#allocation14], 4294966784 }
  0x3d   : > { %1527 = dma.done.wait (%p1670_p1), [#allocation17], 256  }
  0x3e   : > { %1529 = vsyncadd (%p1670_p1), [#allocation17], 4294967040  ;;  %vm517_vm0 = vcmask 261120   ;;  %v1781_v0 = vld [vmem:[%s434_s13] sm:$0xff]  ;;  %v1569_v2 = vmov 32.0   ;;  %v1128_v20 = vld [vmem:[#allocation12] sm:$0xff] }
  0x3f   : > { %v665_v1 = vsel %vm517_vm0, %v1781_v0, 0.0  ;;  %1267 = vrcp.f32 %v1569_v2  ;;  %v1129_v19 = vld [vmem:[#allocation12 + $0x8] sm:$0xff]  ;;  %v1125_v21 = vld [vmem:[#allocation13 + $0x8] sm:$0xff]  ;;  %v1124_v24 = vld [vmem:[#allocation13] sm:$0xff]  ;;  %vm617_vm8 = vcmask 60416   ;;  %s1570_s11 = smov 112  }
  0x40   : > { %666 = vadd.xlane.f32.xlu0 %v665_v1  ;;  %732 = vmatpush.bf16.msra.mxu2 %v1129_v19  ;;  %v1127_v22 = vld [vmem:[#allocation15 + $0x8] sm:$0xff]  ;;  %v1126_v25 = vld [vmem:[#allocation15] sm:$0xff]  ;;  %v1262_v39 = vld [vmem:[#allocation10] ss:$0 sm:$0xff]  ;;  %s1571_s23 = smov 120   ;;  %s1572_s30 = smov 104  }
  0x41   : > { %580 = vmatpush.bf16.msra.mxu0 %v1125_v21  ;;  %609 = vmatpush.bf16.msra.mxu1 %v1127_v22  ;;  %v1263_v42 = vld [vmem:[%s1890_s2] ss:$0 sm:$0xff]  ;;  %s1818_s29 = scalar_lea.vmem [#allocation18], %s1071_s3  ;;  %s1820_s13 = smov 0  }
  0x42   : > { %v1264_v55 = vld [vmem:[%s1894_s6] ss:$0 sm:$0xff] }
  0x43   : > { %v1265_v56 = vld [vmem:[%s1895_s7] ss:$0 sm:$0xff] }
  0x44   : > { %733 = vmatpush.bf16.msra.mxu2 %v1128_v20  ;;  %v1266_v57 = vld [vmem:[%s1896_s8] ss:$0 sm:$0xff] }
  0x45   : > { %v1268_v3 = vpop.eup %1267  ;;  %581 = vmatpush.bf16.msra.mxu0 %v1124_v24  ;;  %610 = vmatpush.bf16.msra.mxu1 %v1126_v25 }
  0x46   : > { %v522_v4 = vmul.f32 32.0, %v1268_v3  ;;  %vm526_vm1 = vweird.f32 %v1268_v3 }
  0x48   : > { %519 = vadd.xlane.f32.xlu0 %v665_v1  ;;  %v523_v5 = vsub.f32 1.0, %v522_v4 }
  0x4a   : > { %v524_v6 = vmul.f32 %v1268_v3, %v523_v5 }
  0x4c   : > { %v525_v7 = vadd.f32 %v1268_v3, %v524_v6 }
  0x4e   : > { %v527_v8 = vsel %vm526_vm1, %v1268_v3, %v525_v7 }
  0xb3   : > { %v667_v9 = vpop.xlane.xlu0 %666 }
  0xb4   : > { %v675_v10 = vmul.f32 %v667_v9, %v527_v8 }
  0xb6   : > { %v676_v11 = vsub.f32 %v1781_v0, %v675_v10 }
  0xb8   : > { %v677_v12 = vmul.f32 %v676_v11, %v676_v11 }
  0xba   : > { %v678_v13 = vsel %vm517_vm0, %v677_v12, 0.0 }
  0xbb   : > { %679 = vadd.xlane.f32.xlu1 %v678_v13  ;;  %v520_v14 = vpop.xlane.xlu0 %519 }
  0xbc   : > { %v528_v15 = vmul.f32 %v527_v8, %v520_v14 }
  0xbe   : > { %v529_v16 = vsub.f32 %v1781_v0, %v528_v15 }
  0xc0   : > { %v530_v17 = vmul.f32 %v529_v16, %v529_v16 }
  0xc2   : > { %v531_v18 = vsel %vm517_vm0, %v530_v17, 0.0 }
  0xc3   : > { %532 = vadd.xlane.f32.xlu1 %v531_v18 }
 0x12e   : > { %v680_v23 = vpop.xlane.xlu1 %679 }
 0x12f   : > { %v681_v26 = vmul.f32 %v680_v23, %v527_v8 }
 0x131   : > { %v682_v27 = vadd.f32 1e-05, %v681_v26 }
 0x133   : > { %1269 = vrsqrt.f32 %v682_v27  ;;  %vm689_vm3 = vweird.f32 %v682_v27 }
 0x136   : > { %v533_v28 = vpop.xlane.xlu1 %532 }
 0x137   : > { %v534_v29 = vmul.f32 %v533_v28, %v527_v8 }
 0x139   : > { %v1270_v30 = vpop.eup %1269  ;;  %v535_v31 = vadd.f32 1e-05, %v534_v29 }
 0x13a   : > { %v684_v32 = vmul.f32 %v1270_v30, %v682_v27  ;;  %vm690_vm2 = vweird.f32 %v1270_v30 }
 0x13b   : > { %1271 = vrsqrt.f32 %v535_v31  ;;  %vm691_vm4 = vmor %vm689_vm3, %vm690_vm2  ;;  %vm542_vm6 = vweird.f32 %v535_v31 }
 0x13c   : > { %v685_v33 = vmul.f32 %v1270_v30, %v684_v32 }
 0x13e   : > { %v686_v34 = vmul.f32 0.5, %v685_v33 }
 0x140   : > { %v687_v35 = vsub.f32 1.5, %v686_v34 }
 0x141   : > { %v1272_v36 = vpop.eup %1271 }
 0x142   : > { %v688_v37 = vmul.f32 %v1270_v30, %v687_v35  ;;  %v537_v38 = vmul.f32 %v1272_v36, %v535_v31  ;;  %vm543_vm5 = vweird.f32 %v1272_v36 }
 0x143   : > { %vm544_vm7 = vmor %vm542_vm6, %vm543_vm5 }
 0x144   : > { %v692_v40 = vsel %vm691_vm4, %v1270_v30, %v688_v37  ;;  %v538_v41 = vmul.f32 %v1272_v36, %v537_v38 }
 0x145   : > { %v693_v43 = vmul.f32 %v692_v40, %v676_v11 }
 0x146   : > { %v539_v44 = vmul.f32 0.5, %v538_v41 }
 0x147   : > { %v697_v45 = vmul.f32 %v1262_v39, %v693_v43 }
 0x148   : > { %v540_v46 = vsub.f32 1.5, %v539_v44 }
 0x149   : > { %v701_v47 = vadd.f32 %v1263_v42, %v697_v45 }
 0x14a   : > { %v541_v48 = vmul.f32 %v1272_v36, %v540_v46 }
 0x14b   : > { %v702_v49 = vpack.c.bf16 %v701_v47, %v701_v47 }
 0x14c   : > { %v545_v50 = vsel %vm544_vm7, %v1272_v36, %v541_v48 }
 0x14d   : > { %1104 = vmatmul.msk.bf16.vlgmr.msra.gmra.mxu2 %vm517_vm0, %v702_v49  ;;  %v546_v51 = vmul.f32 %v545_v50, %v529_v16 }
 0x14f   : > { %v550_v52 = vmul.f32 %v1262_v39, %v546_v51 }
 0x151   : > { %v554_v53 = vadd.f32 %v1263_v42, %v550_v52 }
 0x153   : > { %v555_v54 = vpack.c.bf16 %v554_v53, %v554_v53 }
 0x155   : > { %1086 = vmatmul.msk.bf16.vlgmr.msra.gmra.mxu0 %vm517_vm0, %v555_v54  ;;  %1095 = vmatmul.msk.bf16.vlgmr.msra.gmra.mxu1 %vm517_vm0, %v555_v54 }
 0x1d0   : > { %v735_v58 = vpop.f32.mrf.mxu2 }
 0x1d1   : > { %v736_v59 = vadd.f32 %v1264_v55, %v735_v58 }
 0x1d2   : > { %v583_v60 = vpop.f32.mrf.mxu0  ;;  %v612_v61 = vpop.f32.mrf.mxu1 }
 0x1d3   : > { %v739_v62 = vpack.c.bf16 %v736_v59, %v736_v59  ;;  %v584_v63 = vadd.f32 %v1265_v56, %v583_v60  ;;  %v613_v1 = vadd.f32 %v1266_v57, %v612_v61 }
 0x1d5   : > { %741 = vst.msk [vmem:[#allocation4] sm:$0xf] %vm617_vm8, %v739_v62  ;;  %v587_v2 = vpack.c.bf16 %v584_v63, %v584_v63  ;;  %v616_v3 = vpack.c.bf16 %v613_v1, %v613_v1 }
 0x1d7   : > { %618 = vst.msk [vmem:[#allocation2] sm:$0xf] %vm617_vm8, %v587_v2  ;;  %642 = vrot.lane.b32.xlu1 %v616_v3, %s1570_s11  ;;  %635 = vrot.lane.b32.xlu0 %v587_v2, %s1570_s11 }
 0x1d8   : > { %619 = vst.msk [vmem:[#allocation3] sm:$0xf] %vm617_vm8, %v616_v3  ;;  %621 = vrot.lane.b32.xlu2 %v587_v2, %s1571_s23  ;;  %v737_v4 = vpop.f32.mrf.mxu2 }
 0x1da   : > { %v585_v5 = vpop.f32.mrf.mxu0  ;;  %v614_v6 = vpop.f32.mrf.mxu1 }
 0x1df   : > { %748 = vrot.lane.b32.xlu0 %v739_v62, %s1570_s11 }
 0x1e0   : > { %629 = vrot.lane.b32.xlu2 %v616_v3, %s1571_s23 }
 0x1e8   : > { %648 = vrot.lane.b32.xlu2 %v587_v2, %s1572_s30 }
 0x1f0   : > { %655 = vrot.lane.b32.xlu2 %v616_v3, %s1572_s30 }
 0x1f8   : > { %743 = vrot.lane.b32.xlu2 %v739_v62, %s1571_s23 }
 0x200   : > { %753 = vrot.lane.b32.xlu2 %v739_v62, %s1572_s30 }
 0x232   : > { %v622_v7 = vpop.permute.xlu2 %621 }
 0x233   : > { %627 = vst.msk [vmem:[#allocation2 + $0x4] sm:$0xf] %vm617_vm8, %v622_v7 }
 0x23a   : > { %v630_v8 = vpop.permute.xlu2 %629 }
 0x23b   : > { %634 = vst.msk [vmem:[#allocation3 + $0x4] sm:$0xf] %vm617_vm8, %v630_v8 }
 0x242   : > { %v649_v9 = vpop.permute.xlu2 %648 }
 0x243   : > { %654 = vst.msk [vmem:[#allocation2 + $0xc] sm:$0xf] %vm617_vm8, %v649_v9 }
 0x249   : > { %v643_v10 = vpop.permute.xlu1 %642  ;;  %v636_v11 = vpop.permute.xlu0 %635 }
 0x24a   : > { %647 = vst.msk [vmem:[#allocation3 + $0x8] sm:$0xf] %vm617_vm8, %v643_v10  ;;  %v656_v12 = vpop.permute.xlu2 %655 }
 0x24b   : > { %641 = vst.msk [vmem:[#allocation2 + $0x8] sm:$0xf] %vm617_vm8, %v636_v11 }
 0x24c   : > { %660 = vst.msk [vmem:[#allocation3 + $0xc] sm:$0xf] %vm617_vm8, %v656_v12 }
 0x251   : > { %v749_v13 = vpop.permute.xlu0 %748 }
 0x252   : > { %752 = vst.msk [vmem:[#allocation4 + $0x8] sm:$0xf] %vm617_vm8, %v749_v13  ;;  %v744_v14 = vpop.permute.xlu2 %743 }
 0x253   : > { %747 = vst.msk [vmem:[#allocation4 + $0x4] sm:$0xf] %vm617_vm8, %v744_v14 }
 0x25a   : > { %v754_v15 = vpop.permute.xlu2 %753 }
 0x25b   : > { %757 = vst.msk [vmem:[#allocation4 + $0xc] sm:$0xf] %vm617_vm8, %v754_v15 }
 0x25c LB: >> { %s1826_s5 = sshll.u32 %s1560_s13, 2  ;;  %vm773_vm9 = vcmask 64512   ;;  %vm808_vm10 = vcmask 1043456   ;;  %s763_s13 = sadd.s32 1, %s1560_s13   ;;  %s1560_s13 = sphi %s1820_s13, %s763_s13  }
 0x25d   : >> { %s768_s24 = scalar_lea.vmem [#allocation2], %s1826_s5  ;;  %s765_s3 = scalar_lea.vmem [#allocation4], %s1826_s5 }
 0x25e   : >> { %v769_v16 = vld [vmem:[%s768_s24] sm:$0xf]  ;;  %s771_s28 = scalar_lea.vmem [#allocation3], %s1826_s5  ;;  %s827_s4 = scalar_lea.vmem [#allocation5], %s1826_s5 }
 0x25f   : >> { %v778_v17 = vsel %vm773_vm9, %v769_v16, 0  ;;  %v772_v27 = vld [vmem:[%s771_s28] sm:$0xf]  ;;  %p760_p1 = scmp.ge.s32.totalorder %s763_s13, 4  }
 0x260   : >> { %787 = vmatpush.bf16.xpose.msra.mxu0 %v778_v17  ;;  %v810_v28 = vsel %vm808_vm10, %v772_v27, 0  ;;  %s1573_s1 = smov (%p760_p1), 8   ;;  %s1574_s26 = smov (%p760_p1), 24   ;;  %v1131_v40 = vld [vmem:[#allocation16 + $0x8] sm:$0xff] (%p760_p1)  ;;  %v1130_v41 = vld [vmem:[#allocation16] sm:$0xff] (%p760_p1)  ;;  %vm837_vm11 = vcmask (%p760_p1), 126016  }
 0x261   : >> { %819 = vmatpush.bf16.msra.mxu1 %v810_v28  ;;  %s1575_s14 = smov (%p760_p1), 16   ;;  %vm845_vm12 = vcmask (%p760_p1), 191616   ;;  %vm853_vm13 = vcmask (%p760_p1), 257216   ;;  %s1121_s12 = sshll.u32 (%p760_p1), %s1548_s20, 3  ;;  %v1277_v46 = vld [vmem:[%s1898_s10] ss:$0 sm:$0xff] (%p760_p1) }
 0x262   : >> { %v766_v18 = vld [vmem:[%s765_s3] sm:$0xf]  ;;  %s1921_s5 = sld [smem:[#allocation29_spill]] (%p760_p1)  ;;  %s908_s3 = sshll.u32 (%p760_p1), %s1818_s29, 4  ;;  %s909_s3 = int_to_ptr.vmem [resolvable:$true] %s908_s3 }
 0x263   : > { %s895_s20 = scalar_lea.sflag (%p760_p1), [#allocation9], %s1759_s9 }
 0x267   : >> { %1108 = vmatmul.msk.bf16.vlgmr.msra.gmra.mxu0 %vm773_vm9, %v766_v18 }
 0x268   : > { %885 = vmatpush.bf16.msra.mxu0 (%p760_p1), %v1131_v40  ;;  %s906_s24 = scalar_lea.hbm (%p760_p1), %s1921_s5, %s1121_s12  ;;  %s1478_s12 = scalar_lea.hbm (%p760_p1), %s1921_s5, 16 }
 0x269   : > { %s910_s28 = sshll.u32 (%p760_p1), %s906_s24, 4  ;;  %s911_s28 = int_to_ptr.hbm [resolvable:$true] %s910_s28 }
 0x26c   : > { %886 = vmatpush.bf16.msra.mxu0 (%p760_p1), %v1130_v41 }
 0x2e4   : >> { %v789_v19 = vpop.f32.mrf.mxu0 }
 0x2e5   : >> { %v793_v20 = vsel %vm773_vm9, %v789_v19, -inf }
 0x2e6   : >> { %794 = vmax.xlane.f32.xlu0 %v793_v20 }
 0x2ec   : >> { %v791_v21 = vpop.f32.mrf.mxu0 }
 0x359   : >> { %v795_v22 = vpop.xlane.xlu0 %794 }
 0x35a   : >> { %v796_v23 = vsub.f32 %v789_v19, %v795_v22 }
 0x35c   : >> { %v797_v24 = vmul.f32 1.442695, %v796_v23 }
 0x35e   : >> { %1273 = vpow2.f32 %v797_v24 }
 0x364   : >> { %v1274_v25 = vpop.eup %1273 }
 0x365   : >> { %v799_v26 = vsel %vm773_vm9, %v1274_v25, 0.0 }
 0x366   : >> { %800 = vadd.xlane.f32.xlu0 %v799_v26 }
 0x3d9   : >> { %v801_v29 = vpop.xlane.xlu0 %800 }
 0x3da   : >> { %1275 = vrcp.f32 %v801_v29 }
 0x3e0   : >> { %v1276_v30 = vpop.eup %1275 }
 0x3e1   : >> { %v803_v31 = vmul.f32 %v1276_v30, %v1274_v25 }
 0x3e3   : >> { %v804_v32 = vpack.c.bf16 %v803_v31, %v803_v31 }
 0x3e5   : >> { %1109 = vmatmul.msk.bf16.vlgmr.msra.gmra.mxu1 %vm773_vm9, %v804_v32 }
 0x462   : >> { %v821_v33 = vpop.f32.mrf.mxu1 }
 0x463   : >> { %v825_v34 = vpack.c.bf16 %v821_v33, %v821_v33 }
 0x465   : >> { %828 = vst.msk [vmem:[%s827_s4] sm:$0xf] %vm617_vm8, %v825_v34  ;;  %s1472_s4 = sshra.s32 (%p760_p1), %s911_s28, 4  ;;  %s1473_s4 = int_to_ptr.hbm [resolvable:$true] %s1472_s4 }
 0x466   : > { %762 = sbr.rel (!%p760_p1) target bundleno = 604 (0x25c), region = 157  ;;  %p1479_p11 = scmp.lt.s32.totalorder (%p760_p1), %s1473_s4, %s1921_s5 }
 0x46a   : >> { %v823_v35 = vpop.f32.mrf.mxu1 }
 0x46c   : > { %v832_v36 = vld [vmem:[#allocation5 + $0x4] sm:$0xf]  ;;  %v848_v37 = vld [vmem:[#allocation5 + $0xc] sm:$0xf]  ;;  %v840_v38 = vld [vmem:[#allocation5 + $0x8] sm:$0xf] }
 0x46d   : > { %834 = vrot.lane.b32.xlu0 %v832_v36, %s1573_s1  ;;  %850 = vrot.lane.b32.xlu1 %v848_v37, %s1574_s26  ;;  %v829_v39 = vld [vmem:[#allocation5] sm:$0xf]  ;;  %s1474_s1 = scalar_lea.hbm %s1473_s4, 8 }
 0x46e   : > { %830 = vst.msk [vmem:[#allocation6] sm:$0xf] %vm617_vm8, %v829_v39  ;;  %p1475_p3 = scmp.ne.s32.totalorder %s1473_s4, %s1474_s1  ;;  %p1480_p12 = scmp.lt.s32.totalorder %s1478_s12, %s1474_s1 }
 0x470   : > { %p1476_p9 = pnand %p1475_p3, %p1737_p5  ;;  %p1481_p13 = por %p1480_p12, %p1479_p11 }
 0x472   : > { %p1477_p10 = pneg %p1476_p9 }
 0x474   : > { %p1482_p0 = pnand %p1481_p13, %p1477_p10 }
 0x475   : > { %842 = vrot.lane.b32.xlu0 %v840_v38, %s1575_s14 }
 0x4df   : > { %v835_v42 = vpop.permute.xlu0 %834  ;;  %v851_v43 = vpop.permute.xlu1 %850 }
 0x4e0   : > { %838 = vst.msk [vmem:[#allocation6] sm:$0xf] %vm837_vm11, %v835_v42 }
 0x4e7   : > { %v843_v44 = vpop.permute.xlu0 %842 }
 0x4e8   : > { %846 = vst.msk [vmem:[#allocation6] sm:$0xf] %vm845_vm12, %v843_v44 }
 0x4e9   : > { %854 = vst.msk [vmem:[#allocation6] sm:$0xf] %vm853_vm13, %v851_v43 }
 0x4f0   : > { %v855_v45 = vld [vmem:[#allocation6] sm:$0xf] }
 0x4f1   : > { %1119 = vmatmul.msk.bf16.vlgmr.msra.gmra.mxu0 %vm517_vm0, %v855_v45 }
 0x56e   : > { %v888_v47 = vpop.f32.mrf.mxu0 }
 0x56f   : > { %v889_v48 = vadd.f32 %v1277_v46, %v888_v47 }
 0x571   : > { %v892_v49 = vadd.f32 %v889_v48, %v1781_v0 }
 0x573   : > { %893 = vst.msk [vmem:[%s1818_s29] sm:$0xff] %vm517_vm0, %v892_v49 }
 0x574   : > { %1485 = shalt.err (!%p1482_p0)
}
 0x575   : > { %1154 = dma.vmem_to_hbm [thread:$0]  (%p1737_p5), %s909_s3, 128, %s911_s28, %s895_s20  }
 0x576   : > { %v890_v0 = vpop.f32.mrf.mxu0 }
 0x577 PF: > { %s922_s9 = sand.u32 1, %s1536_s17   ;;  %p1177_p2 = pnand %p1067_p4, %p1745_p7 }
 0x578   : > { %s923_s29 = scalar_lea.sflag [#allocation9], %s922_s9 }
 0x579   : > { %p1178_p6 = pneg %p1177_p2 }
 0x57b   : > { %1531 = dma.done.wait (%p1178_p6), %s923_s29, 128  }
 0x57c   : > { %1533 = vsyncadd (%p1178_p6), %s923_s29, 4294967168  ;;  %s30_s22 = sadd.s32 1, %s1556_s22   ;;  %s1922_s17 = smov %s1540_s18 }
 0x57d   : > { %p27_p8 = scmp.ge.s32.totalorder %s30_s22, 4   ;;  %s1923_s18 = smov %s1544_s19 }
 0x57e   : > { %s1924_s19 = smov %s1743_s15  ;;  %s1925_s20 = smov %s1552_s21 }
 0x57f   : > { %s1926_s21 = smov %s1928_s27  ;;  %29 = sbr.rel (!%p27_p8) target bundleno = 16 (0x10), region = 168 }
 0x584   :  { %929 = vsyncpa [#allocation8], 1 }
 0x585   :  { %931 = vsyncpa [#allocation8 + $0x1], 1 }
 0x586   :  { %932 = vsyncpa [#allocation11], 1 }
 0x587   :  { %933 = vsyncpa [#allocation14], 1 }
 0x588   :  { %934 = vsyncpa [#allocation17], 1 }
 0x589   :  { %935 = vsyncpa [#allocation9], 1 }
 0x58a   :  { %937 = vsyncpa [#allocation9 + $0x1], 1 }

</bundles_post_ra>
